<compile_context>
chip_gen: v5e
topology: v5e:2x2
jax: 0.10.0
libtpu: 0.0.40
codegen_flags: <defaults>
</compile_context>

<pallas_src>
import math

import jax
import jax.numpy as jnp
from jax.experimental import pallas as pl
from jax.experimental.pallas import tpu as pltpu


_LN_EPS = 1e-5  # torch.nn.LayerNorm default


def _round_up(x, m):
    return ((x + m - 1) // m) * m


# ----------------------------------------------------------------------------
# Fused Pallas kernel: the whole MLP stack on one row-tile
# ----------------------------------------------------------------------------
def _make_fused_mlps_kernel(num_layers, use_relu):
    """Kernel applying `num_layers` x (Linear -> LayerNorm -> optional ReLU)."""

    def kernel(x_ref, *refs):
        o_ref = refs[-1]
        p = refs[:-1]                                    # 4 refs per layer
        h = x_ref[...]                                   # (tile_rows, d_in) f32
        for l in range(num_layers):                      # static unroll
            w, b, g, beta = p[4 * l: 4 * l + 4]
            # Linear: MXU matmul with f32 accumulation + bias
            h = jnp.dot(h, w[...], preferred_element_type=jnp.float32) + b[...]
            # LayerNorm over the feature axis (biased variance, eps=1e-5)
            mu = jnp.mean(h, axis=-1, keepdims=True)
            var = jnp.mean(jnp.square(h - mu), axis=-1, keepdims=True)
            h = (h - mu) * jax.lax.rsqrt(var + _LN_EPS)
            h = h * g[...] + beta[...]
            if use_relu[l]:
                h = jnp.maximum(h, 0.0)
        o_ref[...] = h.astype(o_ref.dtype)

    return kernel


# ----------------------------------------------------------------------------
# Wrapper
# ----------------------------------------------------------------------------
def mlps_forward(params, x, *, block_rows=256):
    """params: list of per-layer dicts {w,(din,dout)  b/gamma/beta,(1,dout)  relu:bool}.
    x: (..., din_first).  Returns (..., dout_last) float32."""
    orig_shape = x.shape
    din = orig_shape[-1]
    rows = 1
    for s in orig_shape[:-1]:
        rows *= s
    x2 = x.reshape(rows, din).astype(jnp.float32)

    # Large row tiles; cap at the 8-rounded row count so tiny inputs are one step.
    block_rows = min(block_rows, _round_up(rows, 8))
    pad_rows = _round_up(rows, block_rows)
    if pad_rows != rows:
        x2 = jnp.pad(x2, ((0, pad_rows - rows), (0, 0)))

    num_layers = len(params)
    dout = params[-1]["w"].shape[1]
    use_relu = tuple(bool(p["relu"]) for p in params)

    full = lambda i: (0, 0)
    flat_args = [x2]
    in_specs = [pl.BlockSpec((block_rows, din), lambda i: (i, 0))]
    for p in params:
        dl_in, dl_out = p["w"].shape
        flat_args += [p["w"], p["b"], p["gamma"], p["beta"]]
        in_specs += [
            pl.BlockSpec((dl_in, dl_out), full),   # weight: resident across grid
            pl.BlockSpec((1, dl_out), full),       # bias
            pl.BlockSpec((1, dl_out), full),       # LayerNorm gamma
            pl.BlockSpec((1, dl_out), full),       # LayerNorm beta
        ]

    out = pl.pallas_call(
        _make_fused_mlps_kernel(num_layers, use_relu),
        out_shape=jax.ShapeDtypeStruct((pad_rows, dout), jnp.float32),
        grid_spec=pltpu.PrefetchScalarGridSpec(
            num_scalar_prefetch=0,
            grid=(pad_rows // block_rows,),
            in_specs=in_specs,
            out_specs=pl.BlockSpec((block_rows, dout), lambda i: (i, 0)),
        ),
        compiler_params=pltpu.CompilerParams(
            dimension_semantics=("parallel",)),
    )(*flat_args)

    if pad_rows != rows:
        out = out[:rows]
    return out.reshape(*orig_shape[:-1], dout)


# ----------------------------------------------------------------------------
# Parameter init (mirrors the PyTorch __init__)
# ----------------------------------------------------------------------------
def init_mlps_params(key, input_dims, units, activations):
    if isinstance(units, int):
        input_dims, units, activations = [input_dims], [units], [activations]
    input_dims, units, activations = list(input_dims), list(units), list(activations)
    keys = jax.random.split(key, len(units))
    params = []
    for k, din, dout, act in zip(keys, input_dims, units, activations):
        bound = math.sqrt(6.0 / (din + dout))         # xavier_uniform on (out,in)
        w = jax.random.uniform(k, (din, dout), jnp.float32, -bound, bound)
        params.append(dict(
            w=w,                                      # stored (in,out): y = x @ W
            b=jnp.zeros((1, dout), jnp.float32),      # zeros_ init
            gamma=jnp.ones((1, dout), jnp.float32),   # LayerNorm weight
            beta=jnp.zeros((1, dout), jnp.float32),   # LayerNorm bias
            relu=(act is not None),
        ))
    return params


# Pure-JAX reference for correctness checking.
def mlps_ref(params, x):
    h = x.astype(jnp.float32)
    for p in params:
        h = h @ p["w"] + p["b"]
        mu = jnp.mean(h, axis=-1, keepdims=True)
        var = jnp.mean(jnp.square(h - mu), axis=-1, keepdims=True)
        h = (h - mu) * jax.lax.rsqrt(var + _LN_EPS)
        h = h * p["gamma"] + p["beta"]
        if p["relu"]:
            h = jnp.maximum(h, 0.0)
    return h


if __name__ == "__main__":
    # MLPs(input_dims=(32, 64), units=(64, 128), activations=(F.relu, None))
    B, P, N = 2, 8, 16                      # 256 rows -> one 256-row grid step
    input_dims = (32, 64)
    units = (64, 128)                       # final dim 128 -> lane-dense stores
    activations = ("relu", None)

    key = jax.random.PRNGKey(0)
    k_params, k_x = jax.random.split(key)
    params = init_mlps_params(k_params, input_dims, units, activations)
    x = jax.random.normal(k_x, (B, P, N, input_dims[0]), jnp.float32)

    out = jax.block_until_ready(mlps_forward(params, x))
    ref = jax.block_until_ready(mlps_ref(params, x))

    assert out.shape == (B, P, N, units[-1]), out.shape
    err = float(jnp.max(jnp.abs(out - ref)))
    assert jnp.allclose(out, ref, atol=1e-4, rtol=1e-4), err
    print("KERNEL_OK")
</pallas_src>

<mosaic_0001>
module attributes {stable_mosaic.version = 11 : i64} {
  func.func @kernel(%arg0: i32, %arg1: memref<256x32xf32, #tpu.memory_space<vmem>>, %arg2: memref<32x64xf32, #tpu.memory_space<vmem>>, %arg3: memref<1x64xf32, #tpu.memory_space<vmem>>, %arg4: memref<1x64xf32, #tpu.memory_space<vmem>>, %arg5: memref<1x64xf32, #tpu.memory_space<vmem>>, %arg6: memref<64x128xf32, #tpu.memory_space<vmem>>, %arg7: memref<1x128xf32, #tpu.memory_space<vmem>>, %arg8: memref<1x128xf32, #tpu.memory_space<vmem>>, %arg9: memref<1x128xf32, #tpu.memory_space<vmem>>, %arg10: memref<256x128xf32, #tpu.memory_space<vmem>>) attributes {dimension_semantics = [#tpu.dimension_semantics<parallel>], iteration_bounds = array<i64: 1>, scalar_prefetch = 0 : i64, scratch_operands = 0 : i64, tpu.core_type = #tpu.core_type<tc>, window_params = [{transform_indices = @transform_0, window_bounds = array<i64: 256, 32>}, {pipeline_mode = #tpu.pipeline_mode<synchronous>, transform_indices = @transform_1, window_bounds = array<i64: 32, 64>}, {pipeline_mode = #tpu.pipeline_mode<synchronous>, transform_indices = @transform_2, window_bounds = array<i64: 1, 64>}, {pipeline_mode = #tpu.pipeline_mode<synchronous>, transform_indices = @transform_3, window_bounds = array<i64: 1, 64>}, {pipeline_mode = #tpu.pipeline_mode<synchronous>, transform_indices = @transform_4, window_bounds = array<i64: 1, 64>}, {pipeline_mode = #tpu.pipeline_mode<synchronous>, transform_indices = @transform_5, window_bounds = array<i64: 64, 128>}, {pipeline_mode = #tpu.pipeline_mode<synchronous>, transform_indices = @transform_6, window_bounds = array<i64: 1, 128>}, {pipeline_mode = #tpu.pipeline_mode<synchronous>, transform_indices = @transform_7, window_bounds = array<i64: 1, 128>}, {pipeline_mode = #tpu.pipeline_mode<synchronous>, transform_indices = @transform_8, window_bounds = array<i64: 1, 128>}, {transform_indices = @transform_9, window_bounds = array<i64: 256, 128>}]} {
    %c0 = arith.constant 0 : index
    %c0_0 = arith.constant 0 : index
    %0 = vector.load %arg1[%c0, %c0_0] : memref<256x32xf32, #tpu.memory_space<vmem>>, vector<256x32xf32>
    %c0_1 = arith.constant 0 : index
    %c0_2 = arith.constant 0 : index
    %1 = vector.load %arg2[%c0_1, %c0_2] : memref<32x64xf32, #tpu.memory_space<vmem>>, vector<32x64xf32>
    %cst = arith.constant dense<0.000000e+00> : vector<256x64xf32>
    %2 = tpu.matmul %0, %1, %cst {dimension_numbers = #tpu.dot_dimension_numbers<[1], [0], [0], [1], [0, 0, 1, 1], [], []>} : vector<256x32xf32>, vector<32x64xf32>, vector<256x64xf32> -> vector<256x64xf32>
    %c0_3 = arith.constant 0 : index
    %c0_4 = arith.constant 0 : index
    %3 = vector.load %arg3[%c0_3, %c0_4] : memref<1x64xf32, #tpu.memory_space<vmem>>, vector<1x64xf32>
    %4 = vector.broadcast %3 : vector<1x64xf32> to vector<256x64xf32>
    %5 = arith.addf %2, %4 : vector<256x64xf32>
    %cst_5 = arith.constant dense<0.000000e+00> : vector<256xf32>
    %6 = vector.multi_reduction <add>, %5, %cst_5 [1] : vector<256x64xf32> to vector<256xf32>
    %7 = vector.shape_cast %6 : vector<256xf32> to vector<256x1xf32>
    %cst_6 = arith.constant 6.400000e+01 : f32
    %8 = vector.broadcast %cst_6 : f32 to vector<256x1xf32>
    %9 = arith.divf %7, %8 : vector<256x1xf32>
    %10 = vector.broadcast %9 : vector<256x1xf32> to vector<256x64xf32>
    %11 = arith.subf %5, %10 : vector<256x64xf32>
    %12 = arith.mulf %11, %11 : vector<256x64xf32>
    %cst_7 = arith.constant dense<0.000000e+00> : vector<256xf32>
    %13 = vector.multi_reduction <add>, %12, %cst_7 [1] : vector<256x64xf32> to vector<256xf32>
    %14 = vector.shape_cast %13 : vector<256xf32> to vector<256x1xf32>
    %cst_8 = arith.constant 6.400000e+01 : f32
    %15 = vector.broadcast %cst_8 : f32 to vector<256x1xf32>
    %16 = arith.divf %14, %15 : vector<256x1xf32>
    %17 = vector.broadcast %9 : vector<256x1xf32> to vector<256x64xf32>
    %18 = arith.subf %5, %17 : vector<256x64xf32>
    %cst_9 = arith.constant 9.99999974E-6 : f32
    %19 = vector.broadcast %cst_9 : f32 to vector<256x1xf32>
    %20 = arith.addf %16, %19 : vector<256x1xf32>
    %21 = math.rsqrt %20 : vector<256x1xf32>
    %22 = vector.broadcast %21 : vector<256x1xf32> to vector<256x64xf32>
    %23 = arith.mulf %18, %22 : vector<256x64xf32>
    %c0_10 = arith.constant 0 : index
    %c0_11 = arith.constant 0 : index
    %24 = vector.load %arg4[%c0_10, %c0_11] : memref<1x64xf32, #tpu.memory_space<vmem>>, vector<1x64xf32>
    %25 = vector.broadcast %24 : vector<1x64xf32> to vector<256x64xf32>
    %26 = arith.mulf %23, %25 : vector<256x64xf32>
    %c0_12 = arith.constant 0 : index
    %c0_13 = arith.constant 0 : index
    %27 = vector.load %arg5[%c0_12, %c0_13] : memref<1x64xf32, #tpu.memory_space<vmem>>, vector<1x64xf32>
    %28 = vector.broadcast %27 : vector<1x64xf32> to vector<256x64xf32>
    %29 = arith.addf %26, %28 : vector<256x64xf32>
    %cst_14 = arith.constant 0.000000e+00 : f32
    %30 = vector.broadcast %cst_14 : f32 to vector<256x64xf32>
    %31 = arith.maximumf %29, %30 : vector<256x64xf32>
    %c0_15 = arith.constant 0 : index
    %c0_16 = arith.constant 0 : index
    %32 = vector.load %arg6[%c0_15, %c0_16] : memref<64x128xf32, #tpu.memory_space<vmem>>, vector<64x128xf32>
    %cst_17 = arith.constant dense<0.000000e+00> : vector<256x128xf32>
    %33 = tpu.matmul %31, %32, %cst_17 {dimension_numbers = #tpu.dot_dimension_numbers<[1], [0], [0], [1], [0, 0, 1, 1], [], []>} : vector<256x64xf32>, vector<64x128xf32>, vector<256x128xf32> -> vector<256x128xf32>
    %c0_18 = arith.constant 0 : index
    %c0_19 = arith.constant 0 : index
    %34 = vector.load %arg7[%c0_18, %c0_19] : memref<1x128xf32, #tpu.memory_space<vmem>>, vector<1x128xf32>
    %35 = vector.broadcast %34 : vector<1x128xf32> to vector<256x128xf32>
    %36 = arith.addf %33, %35 : vector<256x128xf32>
    %cst_20 = arith.constant dense<0.000000e+00> : vector<256xf32>
    %37 = vector.multi_reduction <add>, %36, %cst_20 [1] : vector<256x128xf32> to vector<256xf32>
    %38 = vector.shape_cast %37 : vector<256xf32> to vector<256x1xf32>
    %cst_21 = arith.constant 1.280000e+02 : f32
    %39 = vector.broadcast %cst_21 : f32 to vector<256x1xf32>
    %40 = arith.divf %38, %39 : vector<256x1xf32>
    %41 = vector.broadcast %40 : vector<256x1xf32> to vector<256x128xf32>
    %42 = arith.subf %36, %41 : vector<256x128xf32>
    %43 = arith.mulf %42, %42 : vector<256x128xf32>
    %cst_22 = arith.constant dense<0.000000e+00> : vector<256xf32>
    %44 = vector.multi_reduction <add>, %43, %cst_22 [1] : vector<256x128xf32> to vector<256xf32>
    %45 = vector.shape_cast %44 : vector<256xf32> to vector<256x1xf32>
    %cst_23 = arith.constant 1.280000e+02 : f32
    %46 = vector.broadcast %cst_23 : f32 to vector<256x1xf32>
    %47 = arith.divf %45, %46 : vector<256x1xf32>
    %48 = vector.broadcast %40 : vector<256x1xf32> to vector<256x128xf32>
    %49 = arith.subf %36, %48 : vector<256x128xf32>
    %cst_24 = arith.constant 9.99999974E-6 : f32
    %50 = vector.broadcast %cst_24 : f32 to vector<256x1xf32>
    %51 = arith.addf %47, %50 : vector<256x1xf32>
    %52 = math.rsqrt %51 : vector<256x1xf32>
    %53 = vector.broadcast %52 : vector<256x1xf32> to vector<256x128xf32>
    %54 = arith.mulf %49, %53 : vector<256x128xf32>
    %c0_25 = arith.constant 0 : index
    %c0_26 = arith.constant 0 : index
    %55 = vector.load %arg8[%c0_25, %c0_26] : memref<1x128xf32, #tpu.memory_space<vmem>>, vector<1x128xf32>
    %56 = vector.broadcast %55 : vector<1x128xf32> to vector<256x128xf32>
    %57 = arith.mulf %54, %56 : vector<256x128xf32>
    %c0_27 = arith.constant 0 : index
    %c0_28 = arith.constant 0 : index
    %58 = vector.load %arg9[%c0_27, %c0_28] : memref<1x128xf32, #tpu.memory_space<vmem>>, vector<1x128xf32>
    %59 = vector.broadcast %58 : vector<1x128xf32> to vector<256x128xf32>
    %60 = arith.addf %57, %59 : vector<256x128xf32>
    %c0_29 = arith.constant 0 : index
    %c0_30 = arith.constant 0 : index
    %61 = vector.load %arg10[%c0_29, %c0_30] : memref<256x128xf32, #tpu.memory_space<vmem>>, vector<256x128xf32>
    tpu.vector_store %arg10[%c0_29, %c0_30], %60 {strides = array<i32>} : memref<256x128xf32, #tpu.memory_space<vmem>>, vector<256x128xf32>,
    return
  }
  func.func @transform_0(%arg0: i32) -> (i32, i32) {
    %c0_i32 = arith.constant 0 : i32
    %c0_i32_0 = arith.constant 0 : i32
    return %arg0, %c0_i32 : i32, i32
  }
  func.func @transform_1(%arg0: i32) -> (i32, i32) {
    %c0_i32 = arith.constant 0 : i32
    %c0_i32_0 = arith.constant 0 : i32
    %c0_i32_1 = arith.constant 0 : i32
    return %c0_i32, %c0_i32_0 : i32, i32
  }
  func.func @transform_2(%arg0: i32) -> (i32, i32) {
    %c0_i32 = arith.constant 0 : i32
    %c0_i32_0 = arith.constant 0 : i32
    %c0_i32_1 = arith.constant 0 : i32
    return %c0_i32, %c0_i32_0 : i32, i32
  }
  func.func @transform_3(%arg0: i32) -> (i32, i32) {
    %c0_i32 = arith.constant 0 : i32
    %c0_i32_0 = arith.constant 0 : i32
    %c0_i32_1 = arith.constant 0 : i32
    return %c0_i32, %c0_i32_0 : i32, i32
  }
  func.func @transform_4(%arg0: i32) -> (i32, i32) {
    %c0_i32 = arith.constant 0 : i32
    %c0_i32_0 = arith.constant 0 : i32
    %c0_i32_1 = arith.constant 0 : i32
    return %c0_i32, %c0_i32_0 : i32, i32
  }
  func.func @transform_5(%arg0: i32) -> (i32, i32) {
    %c0_i32 = arith.constant 0 : i32
    %c0_i32_0 = arith.constant 0 : i32
    %c0_i32_1 = arith.constant 0 : i32
    return %c0_i32, %c0_i32_0 : i32, i32
  }
  func.func @transform_6(%arg0: i32) -> (i32, i32) {
    %c0_i32 = arith.constant 0 : i32
    %c0_i32_0 = arith.constant 0 : i32
    %c0_i32_1 = arith.constant 0 : i32
    return %c0_i32, %c0_i32_0 : i32, i32
  }
  func.func @transform_7(%arg0: i32) -> (i32, i32) {
    %c0_i32 = arith.constant 0 : i32
    %c0_i32_0 = arith.constant 0 : i32
    %c0_i32_1 = arith.constant 0 : i32
    return %c0_i32, %c0_i32_0 : i32, i32
  }
  func.func @transform_8(%arg0: i32) -> (i32, i32) {
    %c0_i32 = arith.constant 0 : i32
    %c0_i32_0 = arith.constant 0 : i32
    %c0_i32_1 = arith.constant 0 : i32
    return %c0_i32, %c0_i32_0 : i32, i32
  }
  func.func @transform_9(%arg0: i32) -> (i32, i32) {
    %c0_i32 = arith.constant 0 : i32
    %c0_i32_0 = arith.constant 0 : i32
    return %arg0, %c0_i32 : i32, i32
  }
}

</mosaic_0001>

<bundles_post_ra>
// kernel: tpu_custom_call.1
= control target key start
LH: loop header
LB: loop body
LE: loop exit
PB: predicated region body
PF: predicated region fallthrough
CT: control target
= control target key end

     0   :  { %vm73_vm0 = vcmask 261120   ;;  %s4031_s0 = inlined_call_operand.vmem [shape: f32[256,32], index: 0, kind: input, shape index: {}]   ;;  %s4032_s1 = inlined_call_operand.vmem [shape: f32[32,64], index: 1, kind: input, shape index: {}]   ;;  %s4033_s2 = inlined_call_operand.vmem [shape: f32[1,64], index: 2, kind: input, shape index: {}]   ;;  %s4034_s3 = inlined_call_operand.vmem [shape: f32[1,64], index: 3, kind: input, shape index: {}]   ;;  %s4035_s4 = inlined_call_operand.vmem [shape: f32[1,64], index: 4, kind: input, shape index: {}]   ;;  %s4036_s5 = inlined_call_operand.vmem [shape: f32[64,128], index: 5, kind: input, shape index: {}]   ;;  %s4037_s6 = inlined_call_operand.vmem [shape: f32[1,128], index: 6, kind: input, shape index: {}]   ;;  %s4038_s7 = inlined_call_operand.vmem [shape: f32[1,128], index: 7, kind: input, shape index: {}]   ;;  %s4039_s8 = inlined_call_operand.vmem [shape: f32[1,128], index: 8, kind: input, shape index: {}]   ;;  %s4040_s9 = inlined_call_operand.hbm [shape: f32[256,128], index: 9, kind: output, shape index: {}]  }
   0x1   :  { %v68_v0 = vld [vmem:[%s4032_s1 + $0x18] sm:$0xff]  ;;  %v67_v1 = vld [vmem:[%s4032_s1 + $0x10] sm:$0xff]  ;;  %v66_v2 = vld [vmem:[%s4032_s1 + $0x8] sm:$0xff] }
   0x2   :  { %182 = vmatpush.msra.mxu0 %v68_v0  ;;  %2153 = vmatpush.msra.mxu3 %v68_v0  ;;  %v65_v3 = vld [vmem:[%s4032_s1] sm:$0xff]  ;;  %v50_v5 = vld [vmem:[%s4031_s0 + $0x88] sm:$0xff] }
   0x3   :  { %v33_v4 = vld [vmem:[%s4031_s0] sm:$0xff] }
   0x4   :  { %183 = vmatpush.msra.mxu0 %v67_v1  ;;  %2154 = vmatpush.msra.mxu3 %v67_v1 }
   0x6   :  { %184 = vmatpush.msra.mxu0 %v66_v2  ;;  %2155 = vmatpush.msra.mxu3 %v66_v2 }
   0x7   :  { %14 = vsyncpa [#allocation3], 0  ;;  %v34_v6 = vld [vmem:[%s4031_s0 + $0x8] sm:$0xff]  ;;  %v51_v7 = vld [vmem:[%s4031_s0 + $0x90] sm:$0xff]  ;;  %vm283_vm1 = vcmask 523264   ;;  %s2077_s24 = sshll.u32 %s4040_s9, 4  ;;  %s2078_s24 = int_to_ptr.hbm [resolvable:$true] %s2077_s24 }
   0x8   :  { %185 = vmatpush.msra.mxu0 %v65_v3  ;;  %2156 = vmatpush.msra.mxu3 %v65_v3  ;;  %v35_v8 = vld [vmem:[%s4031_s0 + $0x10] sm:$0xff]  ;;  %v52_v9 = vld [vmem:[%s4031_s0 + $0x98] sm:$0xff]  ;;  %v53_v11 = vld [vmem:[%s4031_s0 + $0xa0] sm:$0xff]  ;;  %s2342_s25 = smov 128   ;;  %s2343_s26 = smov 8  }
   0x9   :  { %2089 = vmatmul.msk.f32.vlgmr.msra.gmra.mxu0 %vm73_vm0, %v33_v4  ;;  %2106 = vmatmul.msk.f32.vlgmr.msra.gmra.mxu3 %vm73_vm0, %v50_v5  ;;  %v36_v10 = vld [vmem:[%s4031_s0 + $0x18] sm:$0xff]  ;;  %v37_v12 = vld [vmem:[%s4031_s0 + $0x20] sm:$0xff]  ;;  %v54_v13 = vld [vmem:[%s4031_s0 + $0xa8] sm:$0xff] }
   0xa   :  { %v38_v14 = vld [vmem:[%s4031_s0 + $0x28] sm:$0xff]  ;;  %v55_v15 = vld [vmem:[%s4031_s0 + $0xb0] sm:$0xff]  ;;  %v40_v17 = vld [vmem:[%s4031_s0 + $0x38] sm:$0xff] }
   0xb   :  { %v39_v16 = vld [vmem:[%s4031_s0 + $0x30] sm:$0xff]  ;;  %v41_v18 = vld [vmem:[%s4031_s0 + $0x40] sm:$0xff]  ;;  %v42_v19 = vld [vmem:[%s4031_s0 + $0x48] sm:$0xff] }
   0xc   :  { %v43_v20 = vld [vmem:[%s4031_s0 + $0x50] sm:$0xff]  ;;  %v44_v21 = vld [vmem:[%s4031_s0 + $0x58] sm:$0xff]  ;;  %v45_v23 = vld [vmem:[%s4031_s0 + $0x60] sm:$0xff] }
   0xd   :  { %v56_v22 = vld [vmem:[%s4031_s0 + $0xb8] sm:$0xff]  ;;  %v46_v24 = vld [vmem:[%s4031_s0 + $0x68] sm:$0xff]  ;;  %v57_v25 = vld [vmem:[%s4031_s0 + $0xc0] sm:$0xff] }
   0xe   :  { %v47_v26 = vld [vmem:[%s4031_s0 + $0x70] sm:$0xff]  ;;  %v58_v27 = vld [vmem:[%s4031_s0 + $0xc8] sm:$0xff]  ;;  %v48_v28 = vld [vmem:[%s4031_s0 + $0x78] sm:$0xff] }
   0xf   :  { %v2509_v29 = vld [vmem:[%s4033_s2] ss:$0 sm:$0xff]  ;;  %v59_v30 = vld [vmem:[%s4031_s0 + $0xd0] sm:$0xff]  ;;  %v60_v39 = vld [vmem:[%s4031_s0 + $0xd8] sm:$0xff] }
  0x10   :  { %v49_v32 = vld [vmem:[%s4031_s0 + $0x80] sm:$0xff] }
  0x11   :  { %2090 = vmatmul.msk.f32.gmra.mxu0 %vm73_vm0, %v34_v6  ;;  %2107 = vmatmul.msk.f32.gmra.mxu3 %vm73_vm0, %v51_v7  ;;  %v61_v46 = vld [vmem:[%s4031_s0 + $0xe0] sm:$0xff] }
  0x19   :  { %2091 = vmatmul.msk.f32.gmra.mxu0 %vm73_vm0, %v35_v8  ;;  %2108 = vmatmul.msk.f32.gmra.mxu3 %vm73_vm0, %v52_v9 }
  0x21   :  { %2092 = vmatmul.msk.f32.gmra.mxu0 %vm73_vm0, %v36_v10  ;;  %2109 = vmatmul.msk.f32.gmra.mxu3 %vm73_vm0, %v53_v11  ;;  %v2339_v10 = vmov 64.0  }
  0x22   :  { %2176 = vrcp.f32 %v2339_v10 }
  0x29   :  { %2093 = vmatmul.msk.f32.gmra.mxu0 %vm73_vm0, %v37_v12  ;;  %2110 = vmatmul.msk.f32.gmra.mxu3 %vm73_vm0, %v54_v13  ;;  %v62_v12 = vld [vmem:[%s4031_s0 + $0xe8] sm:$0xff]  ;;  %v2177_v13 = vpop.eup %2176 }
  0x2a   :  { %vm385_vm2 = vweird.f32 %v2177_v13 }
  0x31   :  { %2094 = vmatmul.msk.f32.gmra.mxu0 %vm73_vm0, %v38_v14  ;;  %2111 = vmatmul.msk.f32.gmra.mxu3 %vm73_vm0, %v55_v15  ;;  %v381_v14 = vmul.f32 64.0, %v2177_v13 }
  0x39   :  { %2095 = vmatmul.msk.f32.gmra.mxu0 %vm73_vm0, %v39_v16  ;;  %2112 = vmatmul.msk.f32.gmra.mxu3 %vm73_vm0, %v56_v22  ;;  %v63_v16 = vld [vmem:[%s4031_s0 + $0xf0] sm:$0xff] }
  0x41   :  { %2096 = vmatmul.msk.f32.gmra.mxu0 %vm73_vm0, %v40_v17  ;;  %2113 = vmatmul.msk.f32.gmra.mxu3 %vm73_vm0, %v57_v25  ;;  %v382_v17 = vsub.f32 1.0, %v381_v14 }
  0x49   :  { %2097 = vmatmul.msk.f32.gmra.mxu0 %vm73_vm0, %v41_v18  ;;  %2114 = vmatmul.msk.f32.gmra.mxu3 %vm73_vm0, %v58_v27  ;;  %v383_v18 = vmul.f32 %v2177_v13, %v382_v17 }
  0x51   :  { %2098 = vmatmul.msk.f32.gmra.mxu0 %vm73_vm0, %v42_v19  ;;  %2115 = vmatmul.msk.f32.gmra.mxu3 %vm73_vm0, %v59_v30 }
  0x59   :  { %2099 = vmatmul.msk.f32.gmra.mxu0 %vm73_vm0, %v43_v20  ;;  %2116 = vmatmul.msk.f32.gmra.mxu3 %vm73_vm0, %v60_v39  ;;  %v384_v20 = vadd.f32 %v2177_v13, %v383_v18 }
  0x5b   :  { %v2612_v22 = vsel %vm385_vm2, %v2177_v13, %v384_v20 }
  0x61   :  { %2100 = vmatmul.msk.f32.gmra.mxu0 %vm73_vm0, %v44_v21  ;;  %2117 = vmatmul.msk.f32.gmra.mxu3 %vm73_vm0, %v61_v46  ;;  %v64_v21 = vld [vmem:[%s4031_s0 + $0xf8] sm:$0xff] }
  0x69   :  { %2101 = vmatmul.msk.f32.gmra.mxu0 %vm73_vm0, %v45_v23  ;;  %2118 = vmatmul.msk.f32.gmra.mxu3 %vm73_vm0, %v62_v12 }
  0x71   :  { %2102 = vmatmul.msk.f32.gmra.mxu0 %vm73_vm0, %v46_v24  ;;  %2119 = vmatmul.msk.f32.gmra.mxu3 %vm73_vm0, %v63_v16 }
  0x79   :  { %2103 = vmatmul.msk.f32.gmra.mxu0 %vm73_vm0, %v47_v26  ;;  %2120 = vmatmul.msk.f32.gmra.mxu3 %vm73_vm0, %v64_v21 }
  0x81   :  { %2104 = vmatmul.msk.f32.gmra.mxu0 %vm73_vm0, %v48_v28 }
  0x86   :  { %v187_v31 = vpop.f32.mrf.mxu0 }
  0x87   :  { %v2519_v33 = vadd.f32 %v2509_v29, %v187_v31 }
  0x89   :  { %2105 = vmatmul.msk.f32.gmra.mxu0 %vm73_vm0, %v49_v32  ;;  %v284_v34 = vsel %vm283_vm1, %v2519_v33, 0.0 }
  0x8a   :  { %285 = vadd.xlane.f32.xlu0 %v284_v34 }
  0x8c   :  { %v238_v35 = vpop.f32.mrf.mxu3 }
  0x8d   :  { %v2525_v36 = vadd.f32 %v2509_v29, %v238_v35 }
  0x8e   :  { %v190_v37 = vpop.f32.mrf.mxu0 }
  0x8f   :  { %v335_v38 = vsel %vm283_vm1, %v2525_v36, 0.0  ;;  %v2533_v40 = vadd.f32 %v2509_v29, %v190_v37 }
  0x90   :  { %336 = vadd.xlane.f32.xlu1 %v335_v38 }
  0x91   :  { %v287_v45 = vsel %vm283_vm1, %v2533_v40, 0.0 }
  0x94   :  { %v241_v41 = vpop.f32.mrf.mxu3 }
  0x95   :  { %v2537_v42 = vadd.f32 %v2509_v29, %v241_v41 }
  0x96   :  { %v193_v43 = vpop.f32.mrf.mxu0 }
  0x97   :  { %v338_v44 = vsel %vm283_vm1, %v2537_v42, 0.0  ;;  %v2547_v47 = vadd.f32 %v2509_v29, %v193_v43 }
  0x98   :  { %339 = vadd.xlane.f32.xlu2 %v338_v44  ;;  %288 = vadd.xlane.f32.xlu1 %v287_v45 }
  0x99   :  { %v290_v51 = vsel %vm283_vm1, %v2547_v47, 0.0 }
  0x9c   :  { %v2550_v48 = vpop.f32.mrf.mxu3 }
  0x9d   :  { %v2642_v43 = vadd.f32 %v2509_v29, %v2550_v48 }
  0x9e   :  { %v196_v49 = vpop.f32.mrf.mxu0 }
  0x9f   :  { %v2553_v50 = vadd.f32 %v2509_v29, %v196_v49  ;;  %v341_v46 = vsel %vm283_vm1, %v2642_v43, 0.0 }
  0xa0   :  { %291 = vadd.xlane.f32.xlu2 %v290_v51 }
  0xa1   :  { %v293_v52 = vsel %vm283_vm1, %v2553_v50, 0.0 }
  0xa2   :  { %294 = vadd.xlane.f32.xlu1 %v293_v52 }
  0xa4   :  { %v247_v53 = vpop.f32.mrf.mxu3 }
  0xa5   :  { %v2560_v54 = vadd.f32 %v2509_v29, %v247_v53 }
  0xa6   :  { %v2562_v55 = vpop.f32.mrf.mxu0 }
  0xa7   :  { %v344_v56 = vsel %vm283_vm1, %v2560_v54, 0.0 }
  0xa8   :  { %345 = vadd.xlane.f32.xlu2 %v344_v56 }
  0xac   :  { %v250_v57 = vpop.f32.mrf.mxu3 }
  0xad   :  { %v2567_v58 = vadd.f32 %v2509_v29, %v250_v57 }
  0xae   :  { %v202_v59 = vpop.f32.mrf.mxu0 }
  0xaf   :  { %v2570_v60 = vadd.f32 %v2509_v29, %v202_v59  ;;  %v347_v61 = vsel %vm283_vm1, %v2567_v58, 0.0  ;;  %v2658_v59 = vadd.f32 %v2509_v29, %v2562_v55 }
  0xb0   :  { %348 = vadd.xlane.f32.xlu1 %v347_v61 }
  0xb1   :  { %v299_v62 = vsel %vm283_vm1, %v2570_v60, 0.0 }
  0xb2   :  { %300 = vadd.xlane.f32.xlu2 %v299_v62 }
  0xb4   :  { %v253_v63 = vpop.f32.mrf.mxu3 }
  0xb5   :  { %v2577_v0 = vadd.f32 %v2509_v29, %v253_v63 }
  0xb6   :  { %v2579_v1 = vpop.f32.mrf.mxu0 }
  0xb7   :  { %v350_v2 = vsel %vm283_vm1, %v2577_v0, 0.0  ;;  %v2680_v13 = vadd.f32 %v2509_v29, %v2579_v1 }
  0xb8   :  { %351 = vadd.xlane.f32.xlu1 %v350_v2 }
  0xbc   :  { %v256_v30 = vpop.f32.mrf.mxu3 }
  0xbd   :  { %v2628_v37 = vadd.f32 %v2509_v29, %v256_v30 }
  0xbe   :  { %v208_v3 = vpop.f32.mrf.mxu0 }
  0xbf   :  { %v2584_v4 = vadd.f32 %v2509_v29, %v208_v3  ;;  %v296_v3 = vsel %vm283_vm1, %v2658_v59, 0.0 }
  0xc1   :  { %v305_v5 = vsel %vm283_vm1, %v2584_v4, 0.0 }
  0xc2   :  { %306 = vadd.xlane.f32.xlu1 %v305_v5 }
  0xc4   :  { %v259_v49 = vpop.f32.mrf.mxu3 }
  0xc5   :  { %v2693_v20 = vadd.f32 %v2509_v29, %v259_v49 }
  0xc6   :  { %v211_v6 = vpop.f32.mrf.mxu0 }
  0xc7   :  { %v2647_v51 = vadd.f32 %v2509_v29, %v211_v6 }
  0xc9   :  { %v308_v57 = vsel %vm283_vm1, %v2647_v51, 0.0 }
  0xcc   :  { %v262_v5 = vpop.f32.mrf.mxu3 }
  0xcd   :  { %v2676_v12 = vadd.f32 %v2509_v29, %v262_v5  ;;  %v1102_v5 = vld [vmem:[%s4036_s5 + $0x18] sm:$0xff] }
  0xce   :  { %v2588_v7 = vpop.f32.mrf.mxu0 }
  0xcf   :  { %v359_v16 = vsel %vm283_vm1, %v2676_v12, 0.0 }
  0xd4   :  { %v265_v1 = vpop.f32.mrf.mxu3 }
  0xd6   :  { %v2590_v8 = vpop.f32.mrf.mxu0 }
  0xde   :  { %v2592_v9 = vpop.f32.mrf.mxu0 }
  0xe6   :  { %v2594_v11 = vpop.f32.mrf.mxu0 }
  0xee   :  { %v2600_v15 = vpop.f32.mrf.mxu0 }
  0xf6   :  { %v2606_v19 = vpop.f32.mrf.mxu0 }
  0xfd   :  { %v286_v23 = vpop.xlane.xlu0 %285 }
  0xfe   :  { %v387_v24 = vmul.f32 %v2612_v22, %v286_v23  ;;  %v2615_v25 = vpop.f32.mrf.mxu0 }
 0x100   :  { %v2618_v26 = vsub.f32 %v2519_v33, %v387_v24 }
 0x102   :  { %v451_v27 = vmul.f32 %v2618_v26, %v2618_v26 }
 0x103   :  { %v337_v28 = vpop.xlane.xlu1 %336 }
 0x104   :  { %v404_v31 = vmul.f32 %v2612_v22, %v337_v28  ;;  %v483_v32 = vsel %vm283_vm1, %v451_v27, 0.0  ;;  %v2698_v27 = vadd.f32 %v2509_v29, %v265_v1 }
 0x105   :  { %484 = vadd.xlane.f32.xlu2 %v483_v32 }
 0x106   :  { %v2625_v34 = vsub.f32 %v2525_v36, %v404_v31  ;;  %v235_v35 = vpop.f32.mrf.mxu0  ;;  %v353_v36 = vsel %vm283_vm1, %v2628_v37, 0.0 }
 0x107   :  { %v2631_v33 = vadd.f32 %v2509_v29, %v235_v35  ;;  %v362_v35 = vsel %vm283_vm1, %v2698_v27, 0.0 }
 0x108   :  { %v468_v38 = vmul.f32 %v2625_v34, %v2625_v34 }
 0x109   :  { %v332_v39 = vsel %vm283_vm1, %v2631_v33, 0.0 }
 0x10a   :  { %333 = vadd.xlane.f32.xlu0 %v332_v39  ;;  %v534_v41 = vsel %vm283_vm1, %v468_v38, 0.0 }
 0x10b   :  { %v340_v44 = vpop.xlane.xlu2 %339  ;;  %535 = vadd.xlane.f32.xlu1 %v534_v41  ;;  %v289_v45 = vpop.xlane.xlu1 %288 }
 0x10c   :  { %v405_v52 = vmul.f32 %v2612_v22, %v340_v44  ;;  %v388_v23 = vmul.f32 %v2612_v22, %v289_v45  ;;  %v2721_v44 = vpop.f32.mrf.mxu3 }
 0x10d   :  { %354 = vadd.xlane.f32.xlu2 %v353_v36  ;;  %v2718_v36 = vadd.f32 %v2509_v29, %v2590_v8 }
 0x10e   :  { %v2651_v56 = vsub.f32 %v2537_v42, %v405_v52  ;;  %v2706_v31 = vsub.f32 %v2533_v40, %v388_v23 }
 0x10f   :  { %v314_v49 = vsel %vm283_vm1, %v2718_v36, 0.0 }
 0x110   :  { %v469_v2 = vmul.f32 %v2651_v56, %v2651_v56  ;;  %v452_v41 = vmul.f32 %v2706_v31, %v2706_v31 }
 0x112   :  { %342 = vadd.xlane.f32.xlu0 %v341_v46  ;;  %v537_v10 = vsel %vm283_vm1, %v469_v2, 0.0  ;;  %v486_v46 = vsel %vm283_vm1, %v452_v41, 0.0  ;;  %v1104_v2 = vld [vmem:[%s4036_s5 + $0x28] sm:$0xff] }
 0x113   :  { %v292_v53 = vpop.xlane.xlu2 %291 }
 0x114   :  { %v389_v48 = vmul.f32 %v2612_v22, %v292_v53  ;;  %v2736_v53 = vadd.f32 %v2509_v29, %v2592_v9  ;;  %v1106_v9 = vld [vmem:[%s4036_s5 + $0x38] sm:$0xff] }
 0x115   :  { %v295_v61 = vpop.xlane.xlu1 %294  ;;  %309 = vadd.xlane.f32.xlu2 %v308_v57  ;;  %1215 = vmatpush.msra.mxu1 %v1106_v9 }
 0x116   :  { %v2661_v62 = vsub.f32 %v2547_v47, %v389_v48  ;;  %v390_v63 = vmul.f32 %v2612_v22, %v295_v61  ;;  %v271_v48 = vpop.f32.mrf.mxu3  ;;  %2157 = vmatpush.msra.mxu2 %v1106_v9  ;;  %v2801_v9 = vadd.f32 %v2509_v29, %v2600_v15 }
 0x117   :  { %v2742_v61 = vadd.f32 %v2509_v29, %v271_v48 }
 0x118   :  { %v453_v42 = vmul.f32 %v2661_v62, %v2661_v62  ;;  %v2672_v47 = vsub.f32 %v2553_v50, %v390_v63  ;;  %v302_v50 = vsel %vm283_vm1, %v2680_v13, 0.0 }
 0x119   :  { %v368_v63 = vsel %vm283_vm1, %v2742_v61, 0.0 }
 0x11a   :  { %297 = vadd.xlane.f32.xlu0 %v296_v3  ;;  %v489_v55 = vsel %vm283_vm1, %v453_v42, 0.0  ;;  %v454_v17 = vmul.f32 %v2672_v47, %v2672_v47  ;;  %v1105_v42 = vld [vmem:[%s4036_s5 + $0x30] sm:$0xff]  ;;  %v1103_v3 = vld [vmem:[%s4036_s5 + $0x20] sm:$0xff] }
 0x11b   :  { %v346_v6 = vpop.xlane.xlu2 %345  ;;  %490 = vadd.xlane.f32.xlu1 %v489_v55  ;;  %1216 = vmatpush.msra.mxu1 %v1105_v42  ;;  %v1101_v55 = vld [vmem:[%s4036_s5 + $0x10] sm:$0xff] }
 0x11c   :  { %v407_v14 = vmul.f32 %v2612_v22, %v346_v6  ;;  %v492_v21 = vsel %vm283_vm1, %v454_v17, 0.0  ;;  %2158 = vmatpush.msra.mxu2 %v1105_v42  ;;  %v1100_v6 = vld [vmem:[%s4036_s5 + $0x8] sm:$0xff] }
 0x11d   :  { %538 = vadd.xlane.f32.xlu2 %v537_v10  ;;  %1217 = vmatpush.msra.mxu1 %v1104_v2  ;;  %v1099_v10 = vld [vmem:[%s4036_s5] sm:$0xff] }
 0x11e   :  { %v2690_v18 = vsub.f32 %v2560_v54, %v407_v14  ;;  %v356_v54 = vsel %vm283_vm1, %v2693_v20, 0.0  ;;  %2159 = vmatpush.msra.mxu2 %v1104_v2 }
 0x11f   :  { %1218 = vmatpush.msra.mxu1 %v1103_v3 }
 0x120   :  { %v471_v28 = vmul.f32 %v2690_v18, %v2690_v18  ;;  %2160 = vmatpush.msra.mxu2 %v1103_v3 }
 0x121   :  { %1219 = vmatpush.msra.mxu1 %v1102_v5 }
 0x122   :  { %303 = vadd.xlane.f32.xlu0 %v302_v50  ;;  %v543_v32 = vsel %vm283_vm1, %v471_v28, 0.0  ;;  %2161 = vmatpush.msra.mxu2 %v1102_v5 }
 0x123   :  { %360 = vadd.xlane.f32.xlu1 %v359_v16  ;;  %v349_v24 = vpop.xlane.xlu1 %348  ;;  %1220 = vmatpush.msra.mxu1 %v1101_v55 }
 0x124   :  { %v408_v30 = vmul.f32 %v2612_v22, %v349_v24  ;;  %2162 = vmatpush.msra.mxu2 %v1101_v55  ;;  %v2810_v55 = vld [vmem:[%s4034_s3] ss:$0 sm:$0xff] }
 0x125   :  { %493 = vadd.xlane.f32.xlu2 %v492_v21  ;;  %v301_v38 = vpop.xlane.xlu2 %300  ;;  %1221 = vmatpush.msra.mxu1 %v1100_v6 }
 0x126   :  { %v2712_v39 = vsub.f32 %v2567_v58, %v408_v30  ;;  %v392_v40 = vmul.f32 %v2612_v22, %v301_v38  ;;  %2163 = vmatpush.msra.mxu2 %v1100_v6 }
 0x127   :  { %1222 = vmatpush.msra.mxu1 %v1099_v10 }
 0x128   :  { %v472_v45 = vmul.f32 %v2712_v39, %v2712_v39  ;;  %v2727_v58 = vsub.f32 %v2570_v60, %v392_v40  ;;  %v317_v60 = vsel %vm283_vm1, %v2736_v53, 0.0  ;;  %2164 = vmatpush.msra.mxu2 %v1099_v10  ;;  %v323_v10 = vsel %vm283_vm1, %v2801_v9, 0.0 }
 0x12a   :  { %357 = vadd.xlane.f32.xlu0 %v356_v54  ;;  %v546_v8 = vsel %vm283_vm1, %v472_v45, 0.0  ;;  %v456_v52 = vmul.f32 %v2727_v58, %v2727_v58 }
 0x12b   :  { %544 = vadd.xlane.f32.xlu1 %v543_v32  ;;  %v2770_v14 = vpop.xlane.xlu1 %351  ;;  %v2782_v32 = vpop.f32.mrf.mxu3 }
 0x12c   :  { %v498_v57 = vsel %vm283_vm1, %v456_v52, 0.0 }
 0x12d   :  { %363 = vadd.xlane.f32.xlu2 %v362_v35 }
 0x132   :  { %487 = vadd.xlane.f32.xlu0 %v486_v46 }
 0x133   :  { %315 = vadd.xlane.f32.xlu1 %v314_v49  ;;  %v2805_v3 = vpop.f32.mrf.mxu3 }
 0x135   :  { %547 = vadd.xlane.f32.xlu2 %v546_v8  ;;  %v2778_v54 = vpop.xlane.xlu1 %306 }
 0x13b   :  { %499 = vadd.xlane.f32.xlu1 %v498_v57 }
 0x13d   :  { %318 = vadd.xlane.f32.xlu2 %v317_v60 }
 0x143   :  { %369 = vadd.xlane.f32.xlu1 %v368_v63 }
 0x178   :  { %v485_v16 = vpop.xlane.xlu2 %484 }
 0x179   :  { %v579_v17 = vmul.f32 %v485_v16, %v2612_v22 }
 0x17b   :  { %v611_v50 = vadd.f32 1e-05, %v579_v17  ;;  %v2821_v17 = vld [vmem:[%s4035_s4] ss:$0 sm:$0xff] }
 0x17d   :  { %2178 = vrsqrt.f32 %v611_v50  ;;  %v334_v1 = vpop.xlane.xlu0 %333  ;;  %vm649_vm4 = vweird.f32 %v611_v50 }
 0x17e   :  { %v403_v21 = vmul.f32 %v2612_v22, %v334_v1  ;;  %v2795_v60 = vpop.xlane.xlu1 %535 }
 0x180   :  { %v2775_v23 = vsub.f32 %v2631_v33, %v403_v21  ;;  %v355_v24 = vpop.xlane.xlu2 %354 }
 0x181   :  { %v410_v28 = vmul.f32 %v2612_v22, %v355_v24 }
 0x182   :  { %v467_v30 = vmul.f32 %v2775_v23, %v2775_v23 }
 0x183   :  { %v2179_v35 = vpop.eup %2178  ;;  %v2785_v38 = vsub.f32 %v2628_v37, %v410_v28 }
 0x184   :  { %v644_v41 = vmul.f32 %v2179_v35, %v611_v50  ;;  %v531_v40 = vsel %vm283_vm1, %v467_v30, 0.0  ;;  %vm650_vm3 = vweird.f32 %v2179_v35  ;;  %v2825_v50 = vadd.f32 %v2509_v29, %v2588_v7 }
 0x185   :  { %532 = vadd.xlane.f32.xlu0 %v531_v40  ;;  %v343_v33 = vpop.xlane.xlu0 %342  ;;  %v474_v45 = vmul.f32 %v2785_v38, %v2785_v38  ;;  %vm651_vm5 = vmor %vm649_vm4, %vm650_vm3 }
 0x186   :  { %v645_v46 = vmul.f32 %v2179_v35, %v644_v41  ;;  %v406_v49 = vmul.f32 %v2612_v22, %v343_v33  ;;  %v311_v7 = vsel %vm283_vm1, %v2825_v50, 0.0 }
 0x187   :  { %v552_v8 = vsel %vm283_vm1, %v474_v45, 0.0  ;;  %v280_v45 = vpop.f32.mrf.mxu3 }
 0x188   :  { %v646_v52 = vmul.f32 0.5, %v645_v46  ;;  %v2793_v48 = vsub.f32 %v2642_v43, %v406_v49  ;;  %553 = vadd.xlane.f32.xlu1 %v552_v8  ;;  %v310_v37 = vpop.xlane.xlu2 %309 }
 0x189   :  { %v395_v42 = vmul.f32 %v2612_v22, %v310_v37  ;;  %v2851_v37 = vadd.f32 %v2509_v29, %v280_v45 }
 0x18a   :  { %v647_v57 = vsub.f32 1.5, %v646_v52  ;;  %v470_v63 = vmul.f32 %v2793_v48, %v2793_v48 }
 0x18b   :  { %v2813_v15 = vsub.f32 %v2647_v51, %v395_v42 }
 0x18c   :  { %v648_v2 = vmul.f32 %v2179_v35, %v647_v57  ;;  %v540_v43 = vsel %vm283_vm1, %v470_v63, 0.0 }
 0x18d   :  { %541 = vadd.xlane.f32.xlu0 %v540_v43  ;;  %v298_v5 = vpop.xlane.xlu0 %297  ;;  %v2862_v43 = vadd.f32 %v2509_v29, %v2721_v44 }
 0x18e   :  { %v652_v6 = vsel %vm651_vm5, %v2179_v35, %v648_v2  ;;  %v391_v1 = vmul.f32 %v2612_v22, %v298_v5  ;;  %v491_v24 = vpop.xlane.xlu1 %490  ;;  %v377_v2 = vsel %vm283_vm1, %v2851_v37, 0.0  ;;  %v2866_v5 = vadd.f32 %v2509_v29, %v2782_v32 }
 0x18f   :  { %v963_v16 = vmul.f32 %v652_v6, %v2618_v26  ;;  %v459_v26 = vmul.f32 %v2813_v15, %v2813_v15  ;;  %v581_v35 = vmul.f32 %v491_v24, %v2612_v22  ;;  %v365_v44 = vsel %vm283_vm1, %v2862_v43, 0.0 }
 0x190   :  { %324 = vadd.xlane.f32.xlu1 %v323_v10  ;;  %v2828_v21 = vpop.xlane.xlu2 %538  ;;  %v2835_v30 = vsub.f32 %v2658_v59, %v391_v1  ;;  %v409_v10 = vmul.f32 %v2612_v22, %v2770_v14  ;;  %v371_v32 = vsel %vm283_vm1, %v2866_v5, 0.0 }
 0x191   :  { %v999_v51 = vmul.f32 %v2810_v55, %v963_v16  ;;  %v507_v46 = vsel %vm283_vm1, %v459_v26, 0.0  ;;  %v2848_v52 = vadd.f32 1e-05, %v581_v35 }
 0x192   :  { %v455_v8 = vmul.f32 %v2835_v30, %v2835_v30  ;;  %v2885_v14 = vsub.f32 %v2577_v0, %v409_v10  ;;  %v2916_v10 = vadd.f32 %v2509_v29, %v2606_v19 }
 0x193   :  { %v1035_v28 = vadd.f32 %v2821_v17, %v999_v51  ;;  %2180 = vrsqrt.f32 %v2848_v52  ;;  %vm669_vm8 = vweird.f32 %v2848_v52 }
 0x194   :  { %v495_v63 = vsel %vm283_vm1, %v455_v8, 0.0 }
 0x195   :  { %312 = vadd.xlane.f32.xlu0 %v311_v7  ;;  %v304_v41 = vpop.xlane.xlu0 %303  ;;  %v1067_v40 = vmax.f32 %v1035_v28, 0.0 }
 0x196   :  { %v393_v33 = vmul.f32 %v2612_v22, %v304_v41 }
 0x197   :  { %2121 = vmatmul.msk.f32.vlgmr.msra.gmra.mxu1 %vm283_vm1, %v1067_v40 }
 0x198   :  { %v2844_v49 = vsub.f32 %v2680_v13, %v393_v33  ;;  %508 = vadd.xlane.f32.xlu1 %v507_v46  ;;  %v494_v59 = vpop.xlane.xlu2 %493 }
 0x199   :  { %v582_v6 = vmul.f32 %v494_v59, %v2612_v22  ;;  %v2879_v28 = vpop.eup %2180 }
 0x19a   :  { %v457_v57 = vmul.f32 %v2844_v49, %v2844_v49  ;;  %v664_v40 = vmul.f32 %v2879_v28, %v2848_v52  ;;  %vm670_vm6 = vweird.f32 %v2879_v28  ;;  %v2945_v52 = vadd.f32 %v2509_v29, %v2805_v3 }
 0x19b   :  { %v2873_v24 = vadd.f32 1e-05, %v582_v6  ;;  %v2912_v6 = vadd.f32 %v2509_v29, %v2594_v11  ;;  %vm671_vm9 = vmor %vm669_vm8, %vm670_vm6 }
 0x19c   :  { %v501_v42 = vsel %vm283_vm1, %v457_v57, 0.0  ;;  %v665_v59 = vmul.f32 %v2879_v28, %v664_v40  ;;  %v374_v3 = vsel %vm283_vm1, %v2945_v52, 0.0 }
 0x19d   :  { %496 = vadd.xlane.f32.xlu0 %v495_v63  ;;  %502 = vadd.xlane.f32.xlu2 %v501_v42  ;;  %v358_v13 = vpop.xlane.xlu0 %357  ;;  %2182 = vrsqrt.f32 %v2873_v24  ;;  %v320_v19 = vsel %vm283_vm1, %v2912_v6, 0.0  ;;  %vm679_vm13 = vweird.f32 %v2873_v24 }
 0x19e   :  { %v411_v16 = vmul.f32 %v2612_v22, %v358_v13  ;;  %v666_v42 = vmul.f32 0.5, %v665_v59 }
 0x1a0   :  { %378 = vadd.xlane.f32.xlu1 %v377_v2  ;;  %v364_v1 = vpop.xlane.xlu2 %363  ;;  %v2888_v7 = vsub.f32 %v2693_v20, %v411_v16  ;;  %v473_v20 = vmul.f32 %v2885_v14, %v2885_v14  ;;  %v394_v16 = vmul.f32 %v2612_v22, %v2778_v54  ;;  %v326_v54 = vsel %vm283_vm1, %v2916_v10, 0.0 }
 0x1a1   :  { %v413_v51 = vmul.f32 %v2612_v22, %v364_v1 }
 0x1a2   :  { %v475_v46 = vmul.f32 %v2888_v7, %v2888_v7  ;;  %v549_v57 = vsel %vm283_vm1, %v473_v20, 0.0  ;;  %v2926_v11 = vsub.f32 %v2584_v4, %v394_v16 }
 0x1a3   :  { %v2882_v26 = vsub.f32 %v2698_v27, %v413_v51  ;;  %v2904_v8 = vpop.eup %2182 }
 0x1a4   :  { %v555_v63 = vsel %vm283_vm1, %v475_v46, 0.0  ;;  %v674_v13 = vmul.f32 %v2904_v8, %v2873_v24  ;;  %v458_v59 = vmul.f32 %v2926_v11, %v2926_v11  ;;  %vm680_vm12 = vweird.f32 %v2904_v8 }
 0x1a5   :  { %366 = vadd.xlane.f32.xlu0 %v365_v44  ;;  %372 = vadd.xlane.f32.xlu2 %v371_v32  ;;  %v488_v35 = vpop.xlane.xlu0 %487  ;;  %v477_v41 = vmul.f32 %v2882_v26, %v2882_v26  ;;  %v667_v32 = vsub.f32 1.5, %v666_v42  ;;  %vm681_vm14 = vmor %vm679_vm13, %vm680_vm12 }
 0x1a6   :  { %v580_v27 = vmul.f32 %v488_v35, %v2612_v22  ;;  %v675_v35 = vmul.f32 %v2904_v8, %v674_v13  ;;  %v504_v16 = vsel %vm283_vm1, %v458_v59, 0.0 }
 0x1a7   :  { %v561_v33 = vsel %vm283_vm1, %v477_v41, 0.0  ;;  %v668_v20 = vmul.f32 %v2879_v28, %v667_v32 }
 0x1a8   :  { %v612_v0 = vadd.f32 1e-05, %v580_v27  ;;  %562 = vadd.xlane.f32.xlu1 %v561_v33  ;;  %v2897_v45 = vpop.xlane.xlu2 %547 }
 0x1aa   :  { %2184 = vrsqrt.f32 %v612_v0  ;;  %vm659_vm10 = vweird.f32 %v612_v0 }
 0x1ad   :  { %550 = vadd.xlane.f32.xlu0 %v549_v57  ;;  %556 = vadd.xlane.f32.xlu2 %v555_v63  ;;  %v672_v63 = vsel %vm671_vm9, %v2879_v28, %v668_v20  ;;  %v2972_v20 = vadd.f32 %v2509_v29, %v2615_v25 }
 0x1ae   :  { %v965_v32 = vmul.f32 %v672_v63, %v2661_v62  ;;  %v597_v63 = vmul.f32 %v2828_v21, %v2612_v22 }
 0x1b0   :  { %v2185_v2 = vpop.eup %2184  ;;  %v319_v1 = vpop.xlane.xlu2 %318 }
 0x1b1   :  { %v654_v51 = vmul.f32 %v2185_v2, %v612_v0  ;;  %v398_v44 = vmul.f32 %v2612_v22, %v319_v1  ;;  %vm660_vm7 = vweird.f32 %v2185_v2 }
 0x1b2   :  { %vm661_vm11 = vmor %vm659_vm10, %vm660_vm7 }
 0x1b3   :  { %v655_v41 = vmul.f32 %v2185_v2, %v654_v51  ;;  %v2923_v40 = vsub.f32 %v2736_v53, %v398_v44  ;;  %v676_v53 = vmul.f32 0.5, %v675_v35  ;;  %v361_v51 = vpop.xlane.xlu1 %360  ;;  %v1001_v35 = vmul.f32 %v2810_v55, %v965_v32 }
 0x1b4   :  { %v412_v28 = vmul.f32 %v2612_v22, %v361_v51 }
 0x1b5   :  { %v656_v27 = vmul.f32 0.5, %v655_v41  ;;  %321 = vadd.xlane.f32.xlu0 %v320_v19  ;;  %327 = vadd.xlane.f32.xlu2 %v326_v54  ;;  %v462_v33 = vmul.f32 %v2923_v40, %v2923_v40  ;;  %v677_v42 = vsub.f32 1.5, %v676_v53  ;;  %v1037_v19 = vadd.f32 %v2821_v17, %v1001_v35 }
 0x1b6   :  { %v2959_v62 = vsub.f32 %v2676_v12, %v412_v28 }
 0x1b7   :  { %v657_v46 = vsub.f32 1.5, %v656_v27  ;;  %v516_v4 = vsel %vm283_vm1, %v462_v33, 0.0  ;;  %v678_v0 = vmul.f32 %v2904_v8, %v677_v42  ;;  %v1069_v27 = vmax.f32 %v1037_v19, 0.0 }
 0x1b8   :  { %517 = vadd.xlane.f32.xlu1 %v516_v4  ;;  %v476_v24 = vmul.f32 %v2959_v62, %v2959_v62  ;;  %v596_v4 = vmul.f32 %v2795_v60, %v2612_v22  ;;  %v629_v42 = vadd.f32 1e-05, %v597_v63 }
 0x1b9   :  { %v658_v57 = vmul.f32 %v2185_v2, %v657_v46  ;;  %v682_v41 = vsel %vm681_vm14, %v2904_v8, %v678_v0 }
 0x1ba   :  { %v966_v54 = vmul.f32 %v682_v41, %v2672_v47  ;;  %v558_v8 = vsel %vm283_vm1, %v476_v24, 0.0  ;;  %v329_v47 = vsel %vm283_vm1, %v2972_v20, 0.0  ;;  %vm829_vm5 = vweird.f32 %v629_v42 }
 0x1bb   :  { %v662_v13 = vsel %vm661_vm11, %v2185_v2, %v658_v57  ;;  %v545_v46 = vpop.xlane.xlu1 %544  ;;  %v628_v57 = vadd.f32 1e-05, %v596_v4 }
 0x1bc   :  { %v964_v1 = vmul.f32 %v662_v13, %v2706_v31  ;;  %v1002_v33 = vmul.f32 %v2810_v55, %v966_v54  ;;  %v599_v28 = vmul.f32 %v545_v46, %v2612_v22 }
 0x1bd   :  { %505 = vadd.xlane.f32.xlu0 %v504_v16  ;;  %2186 = vrsqrt.f32 %v628_v57  ;;  %vm819_vm0 = vweird.f32 %v628_v57 }
 0x1be   :  { %v1000_v44 = vmul.f32 %v2810_v55, %v964_v1  ;;  %v1038_v12 = vadd.f32 %v2821_v17, %v1002_v33  ;;  %2188 = vrsqrt.f32 %v629_v42 }
 0x1c0   :  { %v1036_v2 = vadd.f32 %v2821_v17, %v1000_v44  ;;  %v1070_v53 = vmax.f32 %v1038_v12, 0.0 }
 0x1c2   :  { %v1068_v31 = vmax.f32 %v1036_v2, 0.0 }
 0x1c3   :  { %v316_v59 = vpop.xlane.xlu1 %315  ;;  %v2187_v25 = vpop.eup %2186 }
 0x1c4   :  { %2122 = vmatmul.msk.f32.gmra.mxu1 %vm283_vm1, %v1068_v31  ;;  %v814_v13 = vmul.f32 %v2187_v25, %v628_v57  ;;  %v2981_v16 = vpop.eup %2188  ;;  %v2989_v31 = vadd.f32 1e-05, %v599_v28  ;;  %vm820_vm15 = vweird.f32 %v2187_v25 }
 0x1c5   :  { %375 = vadd.xlane.f32.xlu0 %v374_v3  ;;  %v824_v32 = vmul.f32 %v2981_v16, %v629_v42  ;;  %vm3005_vm2 = vmor %vm819_vm0, %vm820_vm15  ;;  %vm830_vm3 = vweird.f32 %v2981_v16 }
 0x1c6   :  { %v815_v51 = vmul.f32 %v2187_v25, %v814_v13  ;;  %vm3024_vm6 = vmor %vm829_vm5, %vm830_vm3  ;;  %vm849_vm9 = vweird.f32 %v2989_v31 }
 0x1c7   :  { %v825_v2 = vmul.f32 %v2981_v16, %v824_v32  ;;  %v397_v32 = vmul.f32 %v2612_v22, %v316_v59 }
 0x1c8   :  { %v816_v21 = vmul.f32 0.5, %v815_v51 }
 0x1c9   :  { %v826_v54 = vmul.f32 0.5, %v825_v2 }
 0x1ca   :  { %v817_v35 = vsub.f32 1.5, %v816_v21 }
 0x1cb   :  { %v500_v29 = vpop.xlane.xlu1 %499  ;;  %v827_v46 = vsub.f32 1.5, %v826_v54  ;;  %v3039_v54 = vsub.f32 %v2718_v36, %v397_v32 }
 0x1cc   :  { %2123 = vmatmul.msk.f32.gmra.mxu1 %vm283_vm1, %v1069_v27  ;;  %v584_v41 = vmul.f32 %v500_v29, %v2612_v22  ;;  %v600_v27 = vmul.f32 %v2897_v45, %v2612_v22 }
 0x1cd   :  { %559 = vadd.xlane.f32.xlu0 %v558_v8  ;;  %v828_v57 = vmul.f32 %v2981_v16, %v827_v46 }
 0x1ce   :  { %v3003_v63 = vadd.f32 1e-05, %v600_v27 }
 0x1d3   :  { %v2985_v60 = vpop.xlane.xlu1 %369 }
 0x1d4   :  { %2124 = vmatmul.msk.f32.gmra.mxu1 %vm283_vm1, %v1070_v53  ;;  %v818_v53 = vmul.f32 %v2187_v25, %v817_v35 }
 0x1d5   :  { %330 = vadd.xlane.f32.xlu0 %v329_v47  ;;  %v3000_v47 = vadd.f32 1e-05, %v584_v41 }
 0x1d7   :  { %vm699_vm13 = vweird.f32 %v3000_v47 }
 0x1f8   :  { %v533_v1 = vpop.xlane.xlu0 %532 }
 0x1f9   :  { %v595_v44 = vmul.f32 %v533_v1, %v2612_v22  ;;  %v822_v1 = vsel %vm3005_vm2, %v2187_v25, %v818_v53 }
 0x1fa   :  { %v980_v59 = vmul.f32 %v822_v1, %v2625_v34 }
 0x1fb   :  { %v627_v0 = vadd.f32 1e-05, %v595_v44  ;;  %v2995_v33 = vpop.xlane.xlu1 %553 }
 0x1fd   :  { %2190 = vrsqrt.f32 %v627_v0  ;;  %vm809_vm7 = vweird.f32 %v627_v0 }
 0x1fe   :  { %2192 = vrsqrt.f32 %v2989_v31 }
 0x200   :  { %v542_v3 = vpop.xlane.xlu0 %541 }
 0x201   :  { %v598_v19 = vmul.f32 %v542_v3, %v2612_v22 }
 0x203   :  { %v2191_v24 = vpop.eup %2190  ;;  %v2997_v8 = vadd.f32 1e-05, %v598_v19  ;;  %v325_v41 = vpop.xlane.xlu1 %324 }
 0x204   :  { %v804_v12 = vmul.f32 %v2191_v24, %v627_v0  ;;  %v3014_v44 = vpop.eup %2192  ;;  %vm810_vm4 = vweird.f32 %v2191_v24 }
 0x205   :  { %2194 = vrsqrt.f32 %v2997_v8  ;;  %vm811_vm8 = vmor %vm809_vm7, %vm810_vm4  ;;  %v844_v19 = vmul.f32 %v3014_v44, %v2989_v31  ;;  %vm850_vm10 = vweird.f32 %v3014_v44  ;;  %vm839_vm12 = vweird.f32 %v2997_v8 }
 0x206   :  { %v805_v4 = vmul.f32 %v2191_v24, %v804_v12  ;;  %2196 = vrsqrt.f32 %v3000_v47  ;;  %vm3144_vm0 = vmor %vm849_vm9, %vm850_vm10  ;;  %vm859_vm7 = vweird.f32 %v3003_v63 }
 0x207   :  { %2198 = vrsqrt.f32 %v3003_v63  ;;  %v845_v1 = vmul.f32 %v3014_v44, %v844_v19 }
 0x208   :  { %v806_v29 = vmul.f32 0.5, %v805_v4  ;;  %v313_v13 = vpop.xlane.xlu0 %312 }
 0x209   :  { %v396_v51 = vmul.f32 %v2612_v22, %v313_v13 }
 0x20a   :  { %v807_v28 = vsub.f32 1.5, %v806_v29 }
 0x20b   :  { %v3018_v21 = vpop.eup %2194  ;;  %v3022_v25 = vsub.f32 %v2825_v50, %v396_v51  ;;  %v832_v50 = vsel %vm3024_vm6, %v2981_v16, %v828_v57  ;;  %v1016_v16 = vmul.f32 %v2810_v55, %v980_v59  ;;  %v461_v51 = vmul.f32 %v3039_v54, %v3039_v54 }
 0x20c   :  { %v808_v3 = vmul.f32 %v2191_v24, %v807_v28  ;;  %v834_v35 = vmul.f32 %v3018_v21, %v2997_v8  ;;  %v3041_v27 = vpop.eup %2196  ;;  %v981_v13 = vmul.f32 %v832_v50, %v2651_v56  ;;  %v415_v56 = vmul.f32 %v2612_v22, %v2985_v60 }
 0x20d   :  { %v460_v42 = vmul.f32 %v3022_v25, %v3022_v25  ;;  %v3047_v45 = vpop.eup %2198  ;;  %vm840_vm11 = vweird.f32 %v3018_v21  ;;  %vm700_vm15 = vweird.f32 %v3041_v27 }
 0x20e   :  { %v812_v0 = vsel %vm811_vm8, %v2191_v24, %v808_v3  ;;  %v835_v34 = vmul.f32 %v3018_v21, %v834_v35  ;;  %v854_v3 = vmul.f32 %v3047_v45, %v3003_v63  ;;  %v1052_v35 = vadd.f32 %v2821_v17, %v1016_v16  ;;  %vm3115_vm14 = vmor %vm839_vm12, %vm840_vm11 }
 0x20f   :  { %v510_v12 = vsel %vm283_vm1, %v460_v42, 0.0  ;;  %v979_v53 = vmul.f32 %v812_v0, %v2775_v23  ;;  %v694_v23 = vmul.f32 %v3041_v27, %v3000_v47  ;;  %v1017_v59 = vmul.f32 %v2810_v55, %v981_v13  ;;  %vm3162_vm4 = vmor %vm699_vm13, %vm700_vm15 }
 0x210   :  { %v503_v46 = vpop.xlane.xlu2 %502  ;;  %511 = vadd.xlane.f32.xlu2 %v510_v12  ;;  %v497_v4 = vpop.xlane.xlu0 %496  ;;  %v836_v57 = vmul.f32 0.5, %v835_v34  ;;  %v846_v42 = vmul.f32 0.5, %v845_v1  ;;  %v513_v12 = vsel %vm283_vm1, %v461_v51, 0.0  ;;  %v3075_v60 = vsub.f32 %v2742_v61, %v415_v56 }
 0x211   :  { %v585_v29 = vmul.f32 %v503_v46, %v2612_v22  ;;  %v583_v36 = vmul.f32 %v497_v4, %v2612_v22  ;;  %v1015_v24 = vmul.f32 %v2810_v55, %v979_v53  ;;  %v695_v50 = vmul.f32 %v3041_v27, %v694_v23  ;;  %v509_v34 = vpop.xlane.xlu1 %508 }
 0x212   :  { %v837_v0 = vsub.f32 1.5, %v836_v57  ;;  %v855_v53 = vmul.f32 %v3047_v45, %v854_v3  ;;  %v602_v16 = vmul.f32 %v2995_v33, %v2612_v22  ;;  %v847_v13 = vsub.f32 1.5, %v846_v42 }
 0x213   :  { %v3058_v32 = vadd.f32 1e-05, %v585_v29  ;;  %v3060_v28 = vadd.f32 1e-05, %v583_v36  ;;  %v1051_v2 = vadd.f32 %v2821_v17, %v1015_v24  ;;  %v1084_v24 = vmax.f32 %v1052_v35, 0.0 }
 0x214   :  { %v696_v61 = vmul.f32 0.5, %v695_v50  ;;  %v3085_v1 = vadd.f32 %v2821_v17, %v1017_v59  ;;  %v838_v51 = vmul.f32 %v3018_v21, %v837_v0  ;;  %v856_v3 = vmul.f32 0.5, %v855_v53 }
 0x215   :  { %2200 = vrsqrt.f32 %v3058_v32  ;;  %v1083_v19 = vmax.f32 %v1051_v2, 0.0  ;;  %v400_v56 = vmul.f32 %v2612_v22, %v325_v41  ;;  %v479_v59 = vmul.f32 %v3075_v60, %v3075_v60 }
 0x216   :  { %2202 = vrsqrt.f32 %v3060_v28  ;;  %v3104_v42 = vadd.f32 1e-05, %v602_v16  ;;  %v848_v50 = vmul.f32 %v3014_v44, %v847_v13  ;;  %v842_v0 = vsel %vm3115_vm14, %v3018_v21, %v838_v51 }
 0x217   :  { %2137 = vmatmul.msk.f32.vlgmr.msra.gmra.mxu2 %vm283_vm1, %v1083_v19  ;;  %v697_v19 = vsub.f32 1.5, %v696_v61  ;;  %v587_v16 = vmul.f32 %v509_v34, %v2612_v22  ;;  %v857_v61 = vsub.f32 1.5, %v856_v3  ;;  %vm860_vm3 = vweird.f32 %v3047_v45 }
 0x218   :  { %v373_v46 = vpop.xlane.xlu2 %372  ;;  %514 = vadd.xlane.f32.xlu2 %v513_v12  ;;  %v367_v4 = vpop.xlane.xlu0 %366  ;;  %2204 = vrsqrt.f32 %v3104_v42  ;;  %vm689_vm5 = vweird.f32 %v3060_v28  ;;  %vm3199_vm8 = vmor %vm859_vm7, %vm860_vm3  ;;  %vm709_vm10 = vweird.f32 %v3058_v32 }
 0x219   :  { %v416_v29 = vmul.f32 %v2612_v22, %v373_v46  ;;  %v414_v36 = vmul.f32 %v2612_v22, %v367_v4  ;;  %v3128_v4 = vsub.f32 %v2801_v9, %v400_v56  ;;  %v698_v34 = vmul.f32 %v3041_v27, %v697_v19 }
 0x21a   :  { %v982_v56 = vmul.f32 %v842_v0, %v2793_v48  ;;  %v852_v19 = vsel %vm3144_vm0, %v3014_v44, %v848_v50  ;;  %v3154_v41 = vadd.f32 1e-05, %v587_v16  ;;  %v1085_v44 = vmax.f32 %v3085_v1, 0.0 }
 0x21b   :  { %v3087_v23 = vpop.eup %2200  ;;  %v3092_v33 = vsub.f32 %v2866_v5, %v416_v29  ;;  %v3095_v57 = vsub.f32 %v2862_v43, %v414_v36  ;;  %v567_v36 = vsel %vm283_vm1, %v479_v59, 0.0  ;;  %v464_v31 = vmul.f32 %v3128_v4, %v3128_v4 }
 0x21c   :  { %v3097_v2 = vpop.eup %2202  ;;  %v704_v35 = vmul.f32 %v3087_v23, %v3058_v32  ;;  %v702_v50 = vsel %vm3162_vm4, %v3041_v27, %v698_v34  ;;  %v1018_v47 = vmul.f32 %v2810_v55, %v982_v56  ;;  %v983_v1 = vmul.f32 %v852_v19, %v2690_v18 }
 0x21d   :  { %v684_v5 = vmul.f32 %v3097_v2, %v3060_v28  ;;  %v480_v43 = vmul.f32 %v3092_v33, %v3092_v33  ;;  %v478_v8 = vmul.f32 %v3095_v57, %v3095_v57  ;;  %vm690_vm2 = vweird.f32 %v3097_v2 }
 0x21e   :  { %v705_v12 = vmul.f32 %v3087_v23, %v704_v35  ;;  %v379_v35 = vpop.xlane.xlu1 %378  ;;  %vm691_vm6 = vmor %vm689_vm5, %vm690_vm2  ;;  %vm710_vm9 = vweird.f32 %v3087_v23  ;;  %vm879_vm0 = vweird.f32 %v3104_v42  ;;  %vm729_vm3 = vweird.f32 %v3154_v41 }
 0x21f   :  { %v685_v53 = vmul.f32 %v3097_v2, %v684_v5  ;;  %v570_v46 = vsel %vm283_vm1, %v480_v43, 0.0  ;;  %2138 = vmatmul.msk.f32.gmra.mxu2 %vm283_vm1, %v1084_v24  ;;  %v564_v13 = vsel %vm283_vm1, %v478_v8, 0.0  ;;  %v418_v48 = vmul.f32 %v2612_v22, %v379_v35  ;;  %vm3229_vm11 = vmor %vm709_vm10, %vm710_vm9 }
 0x220   :  { %571 = vadd.xlane.f32.xlu1 %v570_v46  ;;  %v557_v29 = vpop.xlane.xlu2 %556  ;;  %v551_v21 = vpop.xlane.xlu0 %550  ;;  %568 = vadd.xlane.f32.xlu2 %v567_v36  ;;  %v706_v59 = vmul.f32 0.5, %v705_v12  ;;  %v858_v46 = vmul.f32 %v3047_v45, %v857_v61  ;;  %v522_v36 = vsel %vm283_vm1, %v464_v31, 0.0  ;;  %v1054_v35 = vadd.f32 %v2821_v17, %v1018_v47 }
 0x221   :  { %v686_v51 = vmul.f32 0.5, %v685_v53  ;;  %565 = vadd.xlane.f32.xlu0 %v564_v13  ;;  %v601_v9 = vmul.f32 %v551_v21, %v2612_v22  ;;  %v603_v24 = vmul.f32 %v557_v29, %v2612_v22  ;;  %v3176_v53 = vpop.eup %2204  ;;  %v3183_v27 = vsub.f32 %v2851_v37, %v418_v48 }
 0x222   :  { %v707_v16 = vsub.f32 1.5, %v706_v59  ;;  %v874_v37 = vmul.f32 %v3176_v53, %v3104_v42  ;;  %v1019_v59 = vmul.f32 %v2810_v55, %v983_v1  ;;  %v1086_v8 = vmax.f32 %v1054_v35, 0.0 }
 0x223   :  { %v687_v5 = vsub.f32 1.5, %v686_v51  ;;  %v3149_v43 = vadd.f32 1e-05, %v601_v9  ;;  %v3172_v12 = vadd.f32 1e-05, %v603_v24  ;;  %v862_v24 = vsel %vm3199_vm8, %v3047_v45, %v858_v46 }
 0x224   :  { %v708_v63 = vmul.f32 %v3087_v23, %v707_v16  ;;  %v482_v3 = vmul.f32 %v3183_v27, %v3183_v27  ;;  %v875_v45 = vmul.f32 %v3176_v53, %v874_v37  ;;  %vm880_vm15 = vweird.f32 %v3176_v53 }
 0x225   :  { %v688_v0 = vmul.f32 %v3097_v2, %v687_v5  ;;  %2206 = vrsqrt.f32 %v3149_v43  ;;  %vm869_vm13 = vweird.f32 %v3149_v43  ;;  %vm3298_vm2 = vmor %vm879_vm0, %vm880_vm15  ;;  %vm889_vm9 = vweird.f32 %v3172_v12 }
 0x226   :  { %2208 = vrsqrt.f32 %v3154_v41  ;;  %v576_v16 = vsel %vm283_vm1, %v482_v3, 0.0 }
 0x227   :  { %v692_v28 = vsel %vm691_vm6, %v3097_v2, %v688_v0  ;;  %2139 = vmatmul.msk.f32.gmra.mxu2 %vm283_vm1, %v1085_v44  ;;  %v968_v2 = vmul.f32 %v702_v50, %v2727_v58  ;;  %2210 = vrsqrt.f32 %v3172_v12  ;;  %v712_v0 = vsel %vm3229_vm11, %v3087_v23, %v708_v63  ;;  %v563_v44 = vpop.xlane.xlu1 %562  ;;  %v1224_v63 = vpop.f32.mrf.mxu1 }
 0x228   :  { %v328_v29 = vpop.xlane.xlu2 %327  ;;  %v322_v13 = vpop.xlane.xlu0 %321  ;;  %v967_v21 = vmul.f32 %v692_v28, %v2835_v30  ;;  %523 = vadd.xlane.f32.xlu2 %v522_v36  ;;  %v984_v23 = vmul.f32 %v862_v24, %v2712_v39  ;;  %v969_v37 = vmul.f32 %v712_v0, %v2844_v49  ;;  %v3257_v39 = vld [vmem:[%s4037_s6] ss:$0 sm:$0xff] }
 0x229   :  { %v401_v61 = vmul.f32 %v2612_v22, %v328_v29  ;;  %v399_v18 = vmul.f32 %v2612_v22, %v322_v13  ;;  %v1004_v5 = vmul.f32 %v2810_v55, %v968_v2  ;;  %v1055_v29 = vadd.f32 %v2821_v17, %v1019_v59 }
 0x22a   :  { %v1003_v51 = vmul.f32 %v2810_v55, %v967_v21  ;;  %v3277_v48 = vadd.f32 %v3257_v39, %v1224_v63 }
 0x22b   :  { %v3206_v58 = vsub.f32 %v2916_v10, %v401_v61  ;;  %v3209_v9 = vsub.f32 %v2912_v6, %v399_v18  ;;  %v3211_v34 = vpop.eup %2206  ;;  %v876_v61 = vmul.f32 0.5, %v875_v45  ;;  %v605_v18 = vmul.f32 %v563_v44, %v2612_v22 }
 0x22c   :  { %v1039_v56 = vadd.f32 %v2821_v17, %v1003_v51  ;;  %v864_v10 = vmul.f32 %v3211_v34, %v3149_v43  ;;  %v3226_v19 = vpop.eup %2208  ;;  %v1040_v2 = vadd.f32 %v2821_v17, %v1004_v5  ;;  %vm870_vm12 = vweird.f32 %v3211_v34 }
 0x22d   :  { %v465_v6 = vmul.f32 %v3206_v58, %v3206_v58  ;;  %v463_v32 = vmul.f32 %v3209_v9, %v3209_v9  ;;  %v3240_v46 = vpop.eup %2210  ;;  %v724_v36 = vmul.f32 %v3226_v19, %v3154_v41  ;;  %v1087_v24 = vmax.f32 %v1055_v29, 0.0  ;;  %vm3271_vm14 = vmor %vm869_vm13, %vm870_vm12 }
 0x22e   :  { %v1071_v31 = vmax.f32 %v1039_v56, 0.0  ;;  %v865_v50 = vmul.f32 %v3211_v34, %v864_v10  ;;  %v884_v51 = vmul.f32 %v3240_v46, %v3172_v12  ;;  %v1020_v56 = vmul.f32 %v2810_v55, %v984_v23 }
 0x22f   :  { %v525_v47 = vsel %vm283_vm1, %v465_v6, 0.0  ;;  %2140 = vmatmul.msk.f32.gmra.mxu2 %vm283_vm1, %v1086_v8  ;;  %v519_v28 = vsel %vm283_vm1, %v463_v32, 0.0  ;;  %v725_v3 = vmul.f32 %v3226_v19, %v724_v36  ;;  %v877_v59 = vsub.f32 1.5, %v876_v61 }
 0x230   :  { %2125 = vmatmul.msk.f32.gmra.mxu1 %vm283_vm1, %v1071_v31  ;;  %v506_v1 = vpop.xlane.xlu0 %505  ;;  %v866_v13 = vmul.f32 0.5, %v865_v50  ;;  %526 = vadd.xlane.f32.xlu1 %v525_v47  ;;  %v3269_v10 = vadd.f32 1e-05, %v605_v18  ;;  %v1072_v5 = vmax.f32 %v1040_v2, 0.0  ;;  %v1005_v45 = vmul.f32 %v2810_v55, %v969_v37 }
 0x231   :  { %577 = vadd.xlane.f32.xlu2 %v576_v16  ;;  %v586_v21 = vmul.f32 %v506_v1, %v2612_v22  ;;  %520 = vadd.xlane.f32.xlu0 %v519_v28  ;;  %v885_v31 = vmul.f32 %v3240_v46, %v884_v51  ;;  %v726_v32 = vmul.f32 0.5, %v725_v3  ;;  %v1056_v44 = vadd.f32 %v2821_v17, %v1020_v56 }
 0x232   :  { %v867_v35 = vsub.f32 1.5, %v866_v13  ;;  %v878_v50 = vmul.f32 %v3176_v53, %v877_v59  ;;  %vm730_vm4 = vweird.f32 %v3226_v19  ;;  %vm890_vm6 = vweird.f32 %v3240_v46 }
 0x233   :  { %v3262_v30 = vadd.f32 1e-05, %v586_v21  ;;  %v886_v28 = vmul.f32 0.5, %v885_v31  ;;  %v727_v36 = vsub.f32 1.5, %v726_v32  ;;  %v1088_v13 = vmax.f32 %v1056_v44, 0.0  ;;  %vm3328_vm7 = vmor %vm729_vm3, %vm730_vm4 }
 0x234   :  { %v868_v49 = vmul.f32 %v3211_v34, %v867_v35  ;;  %vm891_vm11 = vmor %vm889_vm9, %vm890_vm6  ;;  %vm909_vm15 = vweird.f32 %v3269_v10 }
 0x235   :  { %2212 = vrsqrt.f32 %v3262_v30  ;;  %v887_v42 = vsub.f32 1.5, %v886_v28  ;;  %v728_v63 = vmul.f32 %v3226_v19, %v727_v36  ;;  %vm719_vm8 = vweird.f32 %v3262_v30 }
 0x236   :  { %v872_v43 = vsel %vm3271_vm14, %v3211_v34, %v868_v49  ;;  %2214 = vrsqrt.f32 %v3269_v10  ;;  %v1041_v34 = vadd.f32 %v2821_v17, %v1005_v45 }
 0x237   :  { %2141 = vmatmul.msk.f32.gmra.mxu2 %vm283_vm1, %v1087_v24  ;;  %v985_v47 = vmul.f32 %v872_v43, %v2885_v14  ;;  %v882_v14 = vsel %vm3298_vm2, %v3176_v53, %v878_v50  ;;  %v732_v43 = vsel %vm3328_vm7, %v3226_v19, %v728_v63 }
 0x238   :  { %2126 = vmatmul.msk.f32.gmra.mxu1 %vm283_vm1, %v1072_v5  ;;  %v376_v8 = vpop.xlane.xlu0 %375  ;;  %1320 = vadd.xlane.f32.xlu1 %v3277_v48  ;;  %v986_v56 = vmul.f32 %v882_v14, %v2785_v38  ;;  %v888_v5 = vmul.f32 %v3240_v46, %v887_v42  ;;  %v971_v19 = vmul.f32 %v732_v43, %v2813_v15 }
 0x239   :  { %v417_v0 = vmul.f32 %v2612_v22, %v376_v8  ;;  %v1021_v18 = vmul.f32 %v2810_v55, %v985_v47 }
 0x23a   :  { %v1022_v32 = vmul.f32 %v2810_v55, %v986_v56  ;;  %v892_v44 = vsel %vm891_vm11, %v3240_v46, %v888_v5  ;;  %v1007_v14 = vmul.f32 %v2810_v55, %v971_v19 }
 0x23b   :  { %v2213_v16 = vpop.eup %2212  ;;  %v3294_v1 = vsub.f32 %v2945_v52, %v417_v0  ;;  %v1073_v52 = vmax.f32 %v1041_v34, 0.0  ;;  %v1057_v59 = vadd.f32 %v2821_v17, %v1021_v18  ;;  %v987_v28 = vmul.f32 %v892_v44, %v2888_v7 }
 0x23c   :  { %v714_v29 = vmul.f32 %v2213_v16, %v3262_v30  ;;  %v3309_v37 = vpop.eup %2214  ;;  %vm720_vm5 = vweird.f32 %v2213_v16 }
 0x23d   :  { %v481_v21 = vmul.f32 %v3294_v1, %v3294_v1  ;;  %v904_v6 = vmul.f32 %v3309_v37, %v3269_v10  ;;  %vm721_vm10 = vmor %vm719_vm8, %vm720_vm5  ;;  %v1089_v41 = vmax.f32 %v1057_v59, 0.0  ;;  %vm910_vm13 = vweird.f32 %v3309_v37  ;;  %v3379_v10 = vld [vmem:[%s4034_s3] ss:$0 sm:$0xff] }
 0x23e   :  { %v715_v61 = vmul.f32 %v2213_v16, %v714_v29  ;;  %vm911_vm2 = vmor %vm909_vm15, %vm910_vm13 }
 0x23f   :  { %v573_v2 = vsel %vm283_vm1, %v481_v21, 0.0  ;;  %2142 = vmatmul.msk.f32.gmra.mxu2 %vm283_vm1, %v1088_v13  ;;  %v905_v0 = vmul.f32 %v3309_v37, %v904_v6 }
 0x240   :  { %v716_v51 = vmul.f32 0.5, %v715_v61  ;;  %2127 = vmatmul.msk.f32.gmra.mxu1 %vm283_vm1, %v1073_v52  ;;  %v560_v35 = vpop.xlane.xlu0 %559  ;;  %574 = vadd.xlane.f32.xlu0 %v573_v2  ;;  %v1023_v52 = vmul.f32 %v2810_v55, %v987_v28  ;;  %v1043_v2 = vadd.f32 %v2821_v17, %v1007_v14 }
 0x241   :  { %v604_v53 = vmul.f32 %v560_v35, %v2612_v22  ;;  %v1227_v24 = vpop.f32.mrf.mxu1  ;;  %v906_v23 = vmul.f32 0.5, %v905_v0 }
 0x242   :  { %v717_v3 = vsub.f32 1.5, %v716_v51  ;;  %v3319_v49 = vadd.f32 %v3257_v39, %v1227_v24  ;;  %v1059_v63 = vadd.f32 %v2821_v17, %v1023_v52  ;;  %v1075_v24 = vmax.f32 %v1043_v2, 0.0 }
 0x243   :  { %v636_v45 = vadd.f32 1e-05, %v604_v53  ;;  %v907_v18 = vsub.f32 1.5, %v906_v23 }
 0x244   :  { %v718_v38 = vmul.f32 %v2213_v16, %v717_v3  ;;  %1322 = vadd.xlane.f32.xlu2 %v3319_v49  ;;  %v1091_v59 = vmax.f32 %v1059_v63, 0.0 }
 0x245   :  { %2216 = vrsqrt.f32 %v636_v45  ;;  %vm899_vm14 = vweird.f32 %v636_v45 }
 0x246   :  { %v722_v8 = vsel %vm721_vm10, %v2213_v16, %v718_v38  ;;  %v1058_v16 = vadd.f32 %v2821_v17, %v1022_v32  ;;  %v518_v32 = vpop.xlane.xlu1 %517 }
 0x247   :  { %v970_v30 = vmul.f32 %v722_v8, %v2926_v11  ;;  %2143 = vmatmul.msk.f32.gmra.mxu2 %vm283_vm1, %v1089_v41 }
 0x248   :  { %v331_v12 = vpop.xlane.xlu0 %330  ;;  %v1090_v15 = vmax.f32 %v1058_v16, 0.0 }
 0x249   :  { %v402_v50 = vmul.f32 %v2612_v22, %v331_v12  ;;  %v1230_v34 = vpop.f32.mrf.mxu1  ;;  %v1006_v47 = vmul.f32 %v2810_v55, %v970_v30  ;;  %v908_v55 = vmul.f32 %v3309_v37, %v907_v18 }
 0x24a   :  { %v3369_v3 = vadd.f32 %v3257_v39, %v1230_v34 }
 0x24b   :  { %v2217_v29 = vpop.eup %2216  ;;  %v3349_v46 = vsub.f32 %v2972_v20, %v402_v50  ;;  %v1042_v11 = vadd.f32 %v2821_v17, %v1006_v47  ;;  %v912_v6 = vsel %vm911_vm2, %v3309_v37, %v908_v55 }
 0x24c   :  { %v894_v36 = vmul.f32 %v2217_v29, %v636_v45  ;;  %vm900_vm12 = vweird.f32 %v2217_v29  ;;  %v989_v31 = vmul.f32 %v912_v6, %v2882_v26  ;;  %v590_v26 = vmul.f32 %v518_v32, %v2612_v22 }
 0x24d   :  { %v1074_v13 = vmax.f32 %v1042_v11, 0.0  ;;  %v466_v21 = vmul.f32 %v3349_v46, %v3349_v46  ;;  %vm901_vm0 = vmor %vm899_vm14, %vm900_vm12 }
 0x24e   :  { %v895_v61 = vmul.f32 %v2217_v29, %v894_v36  ;;  %v1025_v43 = vmul.f32 %v3379_v10, %v989_v31  ;;  %v622_v0 = vadd.f32 1e-05, %v590_v26 }
 0x24f   :  { %2128 = vmatmul.msk.f32.gmra.mxu1 %vm283_vm1, %v1074_v13  ;;  %v528_v7 = vsel %vm283_vm1, %v466_v21, 0.0  ;;  %2144 = vmatmul.msk.f32.gmra.mxu2 %vm283_vm1, %v1090_v15 }
 0x250   :  { %v896_v20 = vmul.f32 0.5, %v895_v61  ;;  %529 = vadd.xlane.f32.xlu0 %v528_v7  ;;  %2218 = vrsqrt.f32 %v622_v0  ;;  %vm759_vm7 = vweird.f32 %v622_v0 }
 0x251   :  { %v1233_v42 = vpop.f32.mrf.mxu1 }
 0x252   :  { %v897_v51 = vsub.f32 1.5, %v896_v20  ;;  %v3361_v35 = vadd.f32 %v3257_v39, %v1233_v42 }
 0x254   :  { %v898_v53 = vmul.f32 %v2217_v29, %v897_v51  ;;  %1326 = vadd.xlane.f32.xlu1 %v3361_v35 }
 0x256   :  { %v902_v56 = vsel %vm901_vm0, %v2217_v29, %v898_v53  ;;  %v2219_v12 = vpop.eup %2218 }
 0x257   :  { %2129 = vmatmul.msk.f32.gmra.mxu1 %vm283_vm1, %v1075_v24  ;;  %v988_v5 = vmul.f32 %v902_v56, %v2959_v62  ;;  %2145 = vmatmul.msk.f32.gmra.mxu2 %vm283_vm1, %v1091_v59  ;;  %v3389_v62 = vld [vmem:[%s4035_s4] ss:$0 sm:$0xff]  ;;  %v754_v50 = vmul.f32 %v2219_v12, %v622_v0  ;;  %vm760_vm6 = vweird.f32 %v2219_v12 }
 0x258   :  { %1324 = vadd.xlane.f32.xlu0 %v3369_v3  ;;  %v1061_v8 = vadd.f32 %v3389_v62, %v1025_v43  ;;  %vm3407_vm8 = vmor %vm759_vm7, %vm760_vm6 }
 0x259   :  { %v1024_v45 = vmul.f32 %v3379_v10, %v988_v5  ;;  %v755_v16 = vmul.f32 %v2219_v12, %v754_v50 }
 0x25a   :  { %v1093_v41 = vmax.f32 %v1061_v8, 0.0 }
 0x25b   :  { %v1060_v38 = vadd.f32 %v2821_v17, %v1024_v45  ;;  %v756_v11 = vmul.f32 0.5, %v755_v16 }
 0x25d   :  { %v1092_v37 = vmax.f32 %v1060_v38, 0.0  ;;  %v757_v20 = vsub.f32 1.5, %v756_v11 }
 0x25f   :  { %2146 = vmatmul.msk.f32.gmra.mxu2 %vm283_vm1, %v1092_v37  ;;  %v758_v56 = vmul.f32 %v2219_v12, %v757_v20 }
 0x261   :  { %v762_v8 = vsel %vm3407_vm8, %v2219_v12, %v758_v56 }
 0x267   :  { %2147 = vmatmul.msk.f32.gmra.mxu2 %vm283_vm1, %v1093_v41 }
 0x283   :  { %v512_v17 = vpop.xlane.xlu2 %511 }
 0x284   :  { %v588_v44 = vmul.f32 %v512_v17, %v2612_v22 }
 0x286   :  { %v620_v30 = vadd.f32 1e-05, %v588_v44 }
 0x288   :  { %2220 = vrsqrt.f32 %v620_v30  ;;  %vm739_vm4 = vweird.f32 %v620_v30 }
 0x28b   :  { %v515_v34 = vpop.xlane.xlu2 %514 }
 0x28c   :  { %v589_v47 = vmul.f32 %v515_v34, %v2612_v22 }
 0x28e   :  { %v2221_v19 = vpop.eup %2220  ;;  %v621_v28 = vadd.f32 1e-05, %v589_v47  ;;  %v974_v47 = vmul.f32 %v762_v8, %v2923_v40 }
 0x28f   :  { %v734_v29 = vmul.f32 %v2221_v19, %v620_v30  ;;  %vm740_vm3 = vweird.f32 %v2221_v19 }
 0x290   :  { %2222 = vrsqrt.f32 %v621_v28  ;;  %vm741_vm5 = vmor %vm739_vm4, %vm740_vm3  ;;  %vm749_vm10 = vweird.f32 %v621_v28 }
 0x291   :  { %v735_v23 = vmul.f32 %v2221_v19, %v734_v29 }
 0x293   :  { %v736_v36 = vmul.f32 0.5, %v735_v23  ;;  %v572_v13 = vpop.xlane.xlu1 %571  ;;  %v569_v14 = vpop.xlane.xlu2 %568 }
 0x294   :  { %v608_v21 = vmul.f32 %v572_v13, %v2612_v22  ;;  %v566_v61 = vpop.xlane.xlu0 %565  ;;  %v607_v52 = vmul.f32 %v569_v14, %v2612_v22 }
 0x295   :  { %v737_v15 = vsub.f32 1.5, %v736_v36  ;;  %v606_v18 = vmul.f32 %v566_v61, %v2612_v22  ;;  %v1010_v61 = vmul.f32 %v3379_v10, %v974_v47 }
 0x296   :  { %v2223_v7 = vpop.eup %2222  ;;  %v3399_v42 = vadd.f32 1e-05, %v608_v21  ;;  %v639_v63 = vadd.f32 1e-05, %v607_v52 }
 0x297   :  { %v738_v2 = vmul.f32 %v2221_v19, %v737_v15  ;;  %v744_v51 = vmul.f32 %v2223_v7, %v621_v28  ;;  %v3402_v55 = vadd.f32 1e-05, %v606_v18  ;;  %vm750_vm9 = vweird.f32 %v2223_v7 }
 0x298   :  { %2224 = vrsqrt.f32 %v3399_v42  ;;  %vm751_vm11 = vmor %vm749_vm10, %vm750_vm9  ;;  %vm929_vm14 = vweird.f32 %v639_v63  ;;  %vm939_vm4 = vweird.f32 %v3399_v42 }
 0x299   :  { %v742_v53 = vsel %vm741_vm5, %v2221_v19, %v738_v2  ;;  %v745_v24 = vmul.f32 %v2223_v7, %v744_v51  ;;  %2226 = vrsqrt.f32 %v639_v63  ;;  %vm919_vm0 = vweird.f32 %v3402_v55 }
 0x29a   :  { %2228 = vrsqrt.f32 %v3402_v55  ;;  %v972_v59 = vmul.f32 %v742_v53, %v3022_v25 }
 0x29b   :  { %v746_v6 = vmul.f32 0.5, %v745_v24  ;;  %v524_v5 = vpop.xlane.xlu2 %523 }
 0x29c   :  { %v1008_v45 = vmul.f32 %v3379_v10, %v972_v59  ;;  %v592_v37 = vmul.f32 %v524_v5, %v2612_v22 }
 0x29d   :  { %v747_v38 = vsub.f32 1.5, %v746_v6 }
 0x29e   :  { %v3412_v43 = vpop.eup %2224  ;;  %v1044_v25 = vadd.f32 %v3389_v62, %v1008_v45  ;;  %v3419_v0 = vadd.f32 1e-05, %v592_v37 }
 0x29f   :  { %v2227_v41 = vpop.eup %2226  ;;  %v748_v32 = vmul.f32 %v2223_v7, %v747_v38  ;;  %v934_v26 = vmul.f32 %v3412_v43, %v3399_v42  ;;  %vm940_vm3 = vweird.f32 %v3412_v43 }
 0x2a0   :  { %v2229_v17 = vpop.eup %2228  ;;  %v924_v44 = vmul.f32 %v2227_v41, %v639_v63  ;;  %v1076_v30 = vmax.f32 %v1044_v25, 0.0  ;;  %2230 = vrsqrt.f32 %v3419_v0  ;;  %vm930_vm12 = vweird.f32 %v2227_v41  ;;  %vm3471_vm5 = vmor %vm939_vm4, %vm940_vm3 }
 0x2a1   :  { %v752_v50 = vsel %vm751_vm11, %v2223_v7, %v748_v32  ;;  %v914_v34 = vmul.f32 %v2229_v17, %v3402_v55  ;;  %v935_v16 = vmul.f32 %v3412_v43, %v934_v26  ;;  %vm920_vm13 = vweird.f32 %v2229_v17  ;;  %vm3439_vm15 = vmor %vm929_vm14, %vm930_vm12 }
 0x2a2   :  { %v925_v12 = vmul.f32 %v2227_v41, %v924_v44  ;;  %2130 = vmatmul.msk.f32.gmra.mxu1 %vm283_vm1, %v1076_v30  ;;  %v973_v19 = vmul.f32 %v752_v50, %v3039_v54  ;;  %vm921_vm2 = vmor %vm919_vm0, %vm920_vm13  ;;  %v1046_v55 = vadd.f32 %v3389_v62, %v1010_v61  ;;  %vm779_vm8 = vweird.f32 %v3419_v0 }
 0x2a3   :  { %v915_v28 = vmul.f32 %v2229_v17, %v914_v34  ;;  %v527_v23 = vpop.xlane.xlu1 %526  ;;  %v936_v18 = vmul.f32 0.5, %v935_v16 }
 0x2a4   :  { %v926_v29 = vmul.f32 0.5, %v925_v12  ;;  %v578_v11 = vpop.xlane.xlu2 %577  ;;  %v1009_v36 = vmul.f32 %v3379_v10, %v973_v19  ;;  %v593_v21 = vmul.f32 %v527_v23, %v2612_v22  ;;  %v521_v14 = vpop.xlane.xlu0 %520 }
 0x2a5   :  { %v916_v13 = vmul.f32 0.5, %v915_v28  ;;  %v610_v40 = vmul.f32 %v578_v11, %v2612_v22  ;;  %v591_v54 = vmul.f32 %v521_v14, %v2612_v22  ;;  %v937_v63 = vsub.f32 1.5, %v936_v18 }
 0x2a6   :  { %v927_v15 = vsub.f32 1.5, %v926_v29  ;;  %v1045_v52 = vadd.f32 %v3389_v62, %v1009_v36  ;;  %v3433_v20 = vadd.f32 1e-05, %v593_v21  ;;  %v3435_v2 = vpop.eup %2230 }
 0x2a7   :  { %v917_v7 = vsub.f32 1.5, %v916_v13  ;;  %v3437_v53 = vadd.f32 1e-05, %v591_v54  ;;  %v774_v6 = vmul.f32 %v3435_v2, %v3419_v0  ;;  %v3446_v5 = vadd.f32 1e-05, %v610_v40 }
 0x2a8   :  { %v928_v51 = vmul.f32 %v2227_v41, %v927_v15  ;;  %v1077_v24 = vmax.f32 %v1045_v52, 0.0  ;;  %2232 = vrsqrt.f32 %v3433_v20  ;;  %vm780_vm6 = vweird.f32 %v3435_v2 }
 0x2a9   :  { %v918_v59 = vmul.f32 %v2229_v17, %v917_v7  ;;  %v775_v38 = vmul.f32 %v3435_v2, %v774_v6  ;;  %2234 = vrsqrt.f32 %v3437_v53  ;;  %vm781_vm9 = vmor %vm779_vm8, %vm780_vm6  ;;  %vm769_vm10 = vweird.f32 %v3437_v53 }
 0x2aa   :  { %2131 = vmatmul.msk.f32.gmra.mxu1 %vm283_vm1, %v1077_v24  ;;  %v932_v45 = vsel %vm3439_vm15, %v2227_v41, %v928_v51  ;;  %2236 = vrsqrt.f32 %v3446_v5  ;;  %v938_v41 = vmul.f32 %v3412_v43, %v937_v63  ;;  %vm789_vm13 = vweird.f32 %v3433_v20 }
 0x2ab   :  { %v922_v31 = vsel %vm921_vm2, %v2229_v17, %v918_v59  ;;  %v991_v26 = vmul.f32 %v932_v45, %v3075_v60  ;;  %v776_v44 = vmul.f32 0.5, %v775_v38  ;;  %vm959_vm2 = vweird.f32 %v3446_v5 }
 0x2ac   :  { %v990_v37 = vmul.f32 %v922_v31, %v3095_v57  ;;  %v1078_v57 = vmax.f32 %v1046_v55, 0.0  ;;  %v942_v16 = vsel %vm3471_vm5, %v3412_v43, %v938_v41 }
 0x2ad   :  { %v1236_v8 = vpop.f32.mrf.mxu1  ;;  %v1027_v12 = vmul.f32 %v3379_v10, %v991_v26  ;;  %v777_v28 = vsub.f32 1.5, %v776_v44  ;;  %v992_v14 = vmul.f32 %v942_v16, %v3092_v33 }
 0x2ae   :  { %v3458_v25 = vadd.f32 %v3257_v39, %v1236_v8  ;;  %v1026_v32 = vmul.f32 %v3379_v10, %v990_v37  ;;  %v3464_v17 = vpop.eup %2232 }
 0x2af   :  { %v784_v50 = vmul.f32 %v3464_v17, %v3433_v20  ;;  %v2235_v34 = vpop.eup %2234  ;;  %v1063_v43 = vadd.f32 %v3389_v62, %v1027_v12  ;;  %v778_v54 = vmul.f32 %v3435_v2, %v777_v28  ;;  %v1028_v24 = vmul.f32 %v3379_v10, %v992_v14 }
 0x2b0   :  { %1328 = vadd.xlane.f32.xlu2 %v3458_v25  ;;  %v1062_v30 = vadd.f32 %v3389_v62, %v1026_v32  ;;  %v3477_v19 = vpop.eup %2236  ;;  %v764_v42 = vmul.f32 %v2235_v34, %v3437_v53  ;;  %vm770_vm7 = vweird.f32 %v2235_v34  ;;  %vm790_vm12 = vweird.f32 %v3464_v17 }
 0x2b1   :  { %v785_v23 = vmul.f32 %v3464_v17, %v784_v50  ;;  %v954_v21 = vmul.f32 %v3477_v19, %v3446_v5  ;;  %v1095_v51 = vmax.f32 %v1063_v43, 0.0  ;;  %v782_v56 = vsel %vm781_vm9, %v3435_v2, %v778_v54  ;;  %vm771_vm11 = vmor %vm769_vm10, %vm770_vm7 }
 0x2b2   :  { %2132 = vmatmul.msk.f32.gmra.mxu1 %vm283_vm1, %v1078_v57  ;;  %v1094_v47 = vmax.f32 %v1062_v30, 0.0  ;;  %v765_v11 = vmul.f32 %v2235_v34, %v764_v42  ;;  %v1064_v38 = vadd.f32 %v3389_v62, %v1028_v24  ;;  %v976_v37 = vmul.f32 %v782_v56, %v3128_v4  ;;  %vm3515_vm14 = vmor %vm789_vm13, %vm790_vm12 }
 0x2b3   :  { %v575_v29 = vpop.xlane.xlu0 %574  ;;  %v786_v52 = vmul.f32 0.5, %v785_v23  ;;  %v955_v7 = vmul.f32 %v3477_v19, %v954_v21  ;;  %vm960_vm15 = vweird.f32 %v3477_v19 }
 0x2b4   :  { %2148 = vmatmul.msk.f32.gmra.mxu2 %vm283_vm1, %v1094_v47  ;;  %v609_v36 = vmul.f32 %v575_v29, %v2612_v22  ;;  %v766_v61 = vmul.f32 0.5, %v765_v11  ;;  %v1096_v44 = vmax.f32 %v1064_v38, 0.0  ;;  %v1012_v57 = vmul.f32 %v3379_v10, %v976_v37  ;;  %vm961_vm3 = vmor %vm959_vm2, %vm960_vm15 }
 0x2b5   :  { %v1239_v13 = vpop.f32.mrf.mxu1  ;;  %v787_v59 = vsub.f32 1.5, %v786_v52  ;;  %v956_v45 = vmul.f32 0.5, %v955_v7 }
 0x2b6   :  { %v3489_v40 = vadd.f32 %v3257_v39, %v1239_v13  ;;  %v641_v15 = vadd.f32 1e-05, %v609_v36  ;;  %v767_v18 = vsub.f32 1.5, %v766_v61  ;;  %v1048_v16 = vadd.f32 %v3389_v62, %v1012_v57 }
 0x2b7   :  { %v788_v8 = vmul.f32 %v3464_v17, %v787_v59  ;;  %v957_v32 = vsub.f32 1.5, %v956_v45 }
 0x2b8   :  { %1330 = vadd.xlane.f32.xlu0 %v3489_v40  ;;  %2238 = vrsqrt.f32 %v641_v15  ;;  %v768_v33 = vmul.f32 %v2235_v34, %v767_v18  ;;  %vm949_vm4 = vweird.f32 %v641_v15  ;;  %v1080_v23 = vmax.f32 %v1048_v16, 0.0 }
 0x2b9   :  { %v792_v60 = vsel %vm3515_vm14, %v3464_v17, %v788_v8  ;;  %v958_v20 = vmul.f32 %v3477_v19, %v957_v32 }
 0x2ba   :  { %v772_v6 = vsel %vm771_vm11, %v2235_v34, %v768_v33 }
 0x2bb   :  { %v975_v31 = vmul.f32 %v772_v6, %v3209_v9  ;;  %v962_v17 = vsel %vm961_vm3, %v3477_v19, %v958_v20 }
 0x2bc   :  { %2149 = vmatmul.msk.f32.gmra.mxu2 %vm283_vm1, %v1095_v51  ;;  %v994_v21 = vmul.f32 %v962_v17, %v3183_v27 }
 0x2bd   :  { %v1242_v63 = vpop.f32.mrf.mxu1  ;;  %v1011_v2 = vmul.f32 %v3379_v10, %v975_v31 }
 0x2be   :  { %v3503_v0 = vadd.f32 %v3257_v39, %v1242_v63  ;;  %v2239_v55 = vpop.eup %2238 }
 0x2bf   :  { %v944_v53 = vmul.f32 %v2239_v55, %v641_v15  ;;  %v1047_v41 = vadd.f32 %v3389_v62, %v1011_v2  ;;  %vm950_vm0 = vweird.f32 %v2239_v55  ;;  %v1030_v15 = vmul.f32 %v3379_v10, %v994_v21  ;;  %v1323_v21 = vpop.xlane.xlu2 %1322 }
 0x2c0   :  { %1332 = vadd.xlane.f32.xlu1 %v3503_v0  ;;  %vm951_vm5 = vmor %vm949_vm4, %vm950_vm0  ;;  %v2340_v2 = vmov 128.0  }
 0x2c1   :  { %v945_v26 = vmul.f32 %v2239_v55, %v944_v53  ;;  %v1079_v50 = vmax.f32 %v1047_v41, 0.0  ;;  %v1066_v51 = vadd.f32 %v3389_v62, %v1030_v15 }
 0x2c3   :  { %v530_v9 = vpop.xlane.xlu0 %529  ;;  %v946_v30 = vmul.f32 0.5, %v945_v26  ;;  %2133 = vmatmul.msk.f32.gmra.mxu1 %vm283_vm1, %v1079_v50  ;;  %v1098_v56 = vmax.f32 %v1066_v51, 0.0 }
 0x2c4   :  { %2150 = vmatmul.msk.f32.gmra.mxu2 %vm283_vm1, %v1096_v44  ;;  %v594_v34 = vmul.f32 %v530_v9, %v2612_v22  ;;  %v977_v22 = vmul.f32 %v792_v60, %v3206_v58 }
 0x2c5   :  { %v947_v47 = vsub.f32 1.5, %v946_v30 }
 0x2c6   :  { %v626_v12 = vadd.f32 1e-05, %v594_v34  ;;  %v1013_v36 = vmul.f32 %v3379_v10, %v977_v22 }
 0x2c7   :  { %v948_v42 = vmul.f32 %v2239_v55, %v947_v47  ;;  %v1321_v47 = vpop.xlane.xlu1 %1320 }
 0x2c8   :  { %2240 = vrsqrt.f32 %v626_v12  ;;  %vm799_vm7 = vweird.f32 %v626_v12 }
 0x2c9   :  { %v952_v28 = vsel %vm951_vm5, %v2239_v55, %v948_v42  ;;  %v1272_v55 = vpop.f32.mrf.mxu2  ;;  %2242 = vrcp.f32 %v2340_v2 }
 0x2ca   :  { %v993_v29 = vmul.f32 %v952_v28, %v3294_v1  ;;  %v1049_v1 = vadd.f32 %v3389_v62, %v1013_v36  ;;  %v3578_v42 = vadd.f32 %v3257_v39, %v1272_v55 }
 0x2cb   :  { %2134 = vmatmul.msk.f32.gmra.mxu1 %vm283_vm1, %v1080_v23 }
 0x2cc   :  { %v1245_v11 = vpop.f32.mrf.mxu1  ;;  %v1029_v13 = vmul.f32 %v3379_v10, %v993_v29  ;;  %v1081_v52 = vmax.f32 %v1049_v1, 0.0 }
 0x2cd   :  { %v3534_v5 = vadd.f32 %v3257_v39, %v1245_v11 }
 0x2ce   :  { %v2241_v43 = vpop.eup %2240  ;;  %v1065_v19 = vadd.f32 %v3389_v62, %v1029_v13 }
 0x2cf   :  { %v794_v58 = vmul.f32 %v2241_v43, %v626_v12  ;;  %1334 = vadd.xlane.f32.xlu2 %v3534_v5  ;;  %vm800_vm6 = vweird.f32 %v2241_v43  ;;  %v2243_v32 = vpop.eup %2242  ;;  %v1325_v12 = vpop.xlane.xlu0 %1324 }
 0x2d0   :  { %v1097_v61 = vmax.f32 %v1065_v19, 0.0  ;;  %vm801_vm8 = vmor %vm799_vm7, %vm800_vm6  ;;  %v1385_v26 = vmul.f32 128.0, %v2243_v32  ;;  %v1327_v19 = vpop.xlane.xlu1 %1326 }
 0x2d1   :  { %v795_v14 = vmul.f32 %v2241_v43, %v794_v58 }
 0x2d2   :  { %2151 = vmatmul.msk.f32.gmra.mxu2 %vm283_vm1, %v1097_v61  ;;  %v1386_v57 = vsub.f32 1.0, %v1385_v26 }
 0x2d3   :  { %v796_v54 = vmul.f32 0.5, %v795_v14  ;;  %2135 = vmatmul.msk.f32.gmra.mxu1 %vm283_vm1, %v1081_v52 }
 0x2d4   :  { %v1248_v18 = vpop.f32.mrf.mxu1  ;;  %v1387_v4 = vmul.f32 %v2243_v32, %v1386_v57 }
 0x2d5   :  { %v797_v27 = vsub.f32 1.5, %v796_v54  ;;  %v3545_v7 = vadd.f32 %v3257_v39, %v1248_v18 }
 0x2d6   :  { %v1388_v34 = vadd.f32 %v2243_v32, %v1387_v4 }
 0x2d7   :  { %v798_v24 = vmul.f32 %v2241_v43, %v797_v27  ;;  %1336 = vadd.xlane.f32.xlu0 %v3545_v7 }
 0x2d9   :  { %v802_v33 = vsel %vm801_vm8, %v2241_v43, %v798_v24 }
 0x2da   :  { %v978_v59 = vmul.f32 %v802_v33, %v3349_v46  ;;  %2152 = vmatmul.msk.f32.gmra.mxu2 %vm283_vm1, %v1098_v56  ;;  %v1275_v46 = vpop.f32.mrf.mxu2 }
 0x2dc   :  { %v1014_v6 = vmul.f32 %v3379_v10, %v978_v59 }
 0x2de   :  { %v1050_v63 = vadd.f32 %v3389_v62, %v1014_v6 }
 0x2e0   :  { %v1082_v45 = vmax.f32 %v1050_v63, 0.0 }
 0x2e2   :  { %2136 = vmatmul.msk.f32.gmra.mxu1 %vm283_vm1, %v1082_v45  ;;  %v1278_v8 = vpop.f32.mrf.mxu2  ;;  %vm1389_vm1 = vweird.f32 %v2243_v32 }
 0x2e3   :  { %v3575_v20 = vsel %vm1389_vm1, %v2243_v32, %v1388_v34 }
 0x2e4   :  { %v1391_v22 = vmul.f32 %v3575_v20, %v1321_v47  ;;  %v1393_v17 = vmul.f32 %v3575_v20, %v1325_v12  ;;  %v1392_v58 = vmul.f32 %v3575_v20, %v1323_v21  ;;  %v1394_v54 = vmul.f32 %v3575_v20, %v1327_v19 }
 0x2e6   :  { %v3588_v23 = vsub.f32 %v3277_v48, %v1391_v22  ;;  %v3591_v11 = vsub.f32 %v3369_v3, %v1393_v17  ;;  %v3603_v3 = vadd.f32 %v3257_v39, %v1275_v46  ;;  %v3609_v15 = vsub.f32 %v3319_v49, %v1392_v58 }
 0x2e7   :  { %v3616_v18 = vsub.f32 %v3361_v35, %v1394_v54  ;;  %v3628_v35 = vadd.f32 %v3257_v39, %v1278_v8 }
 0x2e8   :  { %v1455_v36 = vmul.f32 %v3588_v23, %v3588_v23  ;;  %v1457_v13 = vmul.f32 %v3591_v11, %v3591_v11  ;;  %v1456_v51 = vmul.f32 %v3609_v15, %v3609_v15 }
 0x2e9   :  { %v1458_v24 = vmul.f32 %v3616_v18, %v3616_v18 }
 0x2ea   :  { %v1281_v41 = vpop.f32.mrf.mxu2 }
 0x2eb   :  { %v3606_v61 = vadd.f32 %v3257_v39, %v1281_v41 }
 0x2f2   :  { %v1284_v60 = vpop.f32.mrf.mxu2 }
 0x2f3   :  { %v3633_v63 = vadd.f32 %v3257_v39, %v1284_v60 }
 0x2fa   :  { %v1287_v29 = vpop.f32.mrf.mxu2 }
 0x302   :  { %v1290_v48 = vpop.f32.mrf.mxu2 }
 0x303   :  { %v3636_v45 = vadd.f32 %v3257_v39, %v1290_v48 }
 0x30a   :  { %v1293_v49 = vpop.f32.mrf.mxu2 }
 0x312   :  { %v1296_v46 = vpop.f32.mrf.mxu2 }
 0x313   :  { %v3676_v60 = vadd.f32 %v3257_v39, %v1296_v46 }
 0x31a   :  { %v1299_v41 = vpop.f32.mrf.mxu2 }
 0x31b   :  { %v3666_v57 = vadd.f32 %v3257_v39, %v1299_v41 }
 0x31f   :  { %v1251_v31 = vpop.f32.mrf.mxu1 }
 0x320   :  { %v3556_v38 = vadd.f32 %v3257_v39, %v1251_v31 }
 0x322   :  { %1338 = vadd.xlane.f32.xlu1 %v3556_v38  ;;  %v1302_v34 = vpop.f32.mrf.mxu2 }
 0x323   :  { %v1329_v56 = vpop.xlane.xlu2 %1328  ;;  %v3690_v21 = vadd.f32 %v3257_v39, %v1302_v34 }
 0x327   :  { %v1254_v37 = vpop.f32.mrf.mxu1 }
 0x328   :  { %v3560_v53 = vadd.f32 %v3257_v39, %v1254_v37 }
 0x32a   :  { %1340 = vadd.xlane.f32.xlu2 %v3560_v53 }
 0x32b   :  { %v1331_v14 = vpop.xlane.xlu0 %1330 }
 0x32c   :  { %v1396_v52 = vmul.f32 %v3575_v20, %v1331_v14 }
 0x32e   :  { %v3619_v27 = vsub.f32 %v3489_v40, %v1396_v52  ;;  %v1395_v40 = vmul.f32 %v3575_v20, %v1329_v56 }
 0x32f   :  { %v1257_v10 = vpop.f32.mrf.mxu1 }
 0x330   :  { %v3564_v62 = vadd.f32 %v3257_v39, %v1257_v10  ;;  %v1460_v33 = vmul.f32 %v3619_v27, %v3619_v27  ;;  %v3639_v31 = vsub.f32 %v3458_v25, %v1395_v40 }
 0x332   :  { %1342 = vadd.xlane.f32.xlu0 %v3564_v62  ;;  %v1459_v8 = vmul.f32 %v3639_v31, %v3639_v31 }
 0x333   :  { %v1333_v59 = vpop.xlane.xlu1 %1332 }
 0x334   :  { %v1397_v55 = vmul.f32 %v3575_v20, %v1333_v59 }
 0x336   :  { %v3646_v10 = vsub.f32 %v3503_v0, %v1397_v55  ;;  %v3658_v0 = vadd.f32 %v3257_v39, %v1287_v29 }
 0x337   :  { %v1305_v47 = vpop.f32.mrf.mxu2 }
 0x338   :  { %v1461_v25 = vmul.f32 %v3646_v10, %v3646_v10  ;;  %v3700_v14 = vadd.f32 %v3257_v39, %v1305_v47 }
 0x33f   :  { %v1308_v17 = vpop.f32.mrf.mxu2 }
 0x340   :  { %v1260_v44 = vpop.f32.mrf.mxu1  ;;  %v3706_v52 = vadd.f32 %v3257_v39, %v1308_v17 }
 0x341   :  { %v3568_v9 = vadd.f32 %v3257_v39, %v1260_v44  ;;  %v3663_v44 = vadd.f32 %v3257_v39, %v1293_v49 }
 0x342   :  { %v1335_v26 = vpop.xlane.xlu2 %1334 }
 0x343   :  { %1344 = vadd.xlane.f32.xlu1 %v3568_v9 }
 0x348   :  { %v1263_v30 = vpop.f32.mrf.mxu1 }
 0x349   :  { %v3572_v50 = vadd.f32 %v3257_v39, %v1263_v30 }
 0x34a   :  { %v1337_v6 = vpop.xlane.xlu0 %1336 }
 0x34b   :  { %1346 = vadd.xlane.f32.xlu2 %v3572_v50  ;;  %v1399_v37 = vmul.f32 %v3575_v20, %v1337_v6 }
 0x34d   :  { %v3649_v2 = vsub.f32 %v3545_v7, %v1399_v37  ;;  %v1398_v7 = vmul.f32 %v3575_v20, %v1335_v26 }
 0x34f   :  { %v1463_v32 = vmul.f32 %v3649_v2, %v3649_v2  ;;  %v3669_v4 = vsub.f32 %v3534_v5, %v1398_v7 }
 0x350   :  { %v1266_v16 = vpop.f32.mrf.mxu1 }
 0x351   :  { %v3583_v28 = vadd.f32 %v3257_v39, %v1266_v16  ;;  %v1462_v30 = vmul.f32 %v3669_v4, %v3669_v4 }
 0x353   :  { %1348 = vadd.xlane.f32.xlu0 %v3583_v28  ;;  %1352 = vadd.xlane.f32.xlu2 %v3578_v42 }
 0x35b   :  { %1487 = vadd.xlane.f32.xlu0 %v1455_v36  ;;  %1491 = vadd.xlane.f32.xlu2 %v1457_v13 }
 0x35f   :  { %v1269_v43 = vpop.f32.mrf.mxu1 }
 0x360   :  { %v3599_v1 = vadd.f32 %v3257_v39, %v1269_v43 }
 0x362   :  { %1350 = vadd.xlane.f32.xlu1 %v3599_v1 }
 0x363   :  { %1354 = vadd.xlane.f32.xlu0 %v3603_v3  ;;  %1358 = vadd.xlane.f32.xlu2 %v3606_v61 }
 0x36a   :  { %1489 = vadd.xlane.f32.xlu1 %v1456_v51 }
 0x36b   :  { %1493 = vadd.xlane.f32.xlu0 %v1458_v24  ;;  %1497 = vadd.xlane.f32.xlu2 %v1460_v33 }
 0x372   :  { %1356 = vadd.xlane.f32.xlu1 %v3628_v35 }
 0x373   :  { %1360 = vadd.xlane.f32.xlu0 %v3633_v63  ;;  %1364 = vadd.xlane.f32.xlu2 %v3636_v45 }
 0x37a   :  { %1495 = vadd.xlane.f32.xlu1 %v1459_v8 }
 0x37b   :  { %1499 = vadd.xlane.f32.xlu0 %v1461_v25  ;;  %1503 = vadd.xlane.f32.xlu2 %v1463_v32 }
 0x382   :  { %1362 = vadd.xlane.f32.xlu1 %v3658_v0 }
 0x383   :  { %1366 = vadd.xlane.f32.xlu0 %v3663_v44  ;;  %1370 = vadd.xlane.f32.xlu2 %v3666_v57 }
 0x38a   :  { %1501 = vadd.xlane.f32.xlu1 %v1462_v30 }
 0x392   :  { %1368 = vadd.xlane.f32.xlu1 %v3676_v60 }
 0x395   :  { %v1339_v12 = vpop.xlane.xlu1 %1338 }
 0x396   :  { %v1400_v16 = vmul.f32 %v3575_v20, %v1339_v12 }
 0x398   :  { %v3681_v5 = vsub.f32 %v3556_v38, %v1400_v16  ;;  %v1311_v38 = vpop.f32.mrf.mxu2 }
 0x39a   :  { %v1464_v22 = vmul.f32 %v3681_v5, %v3681_v5 }
 0x39c   :  { %1505 = vadd.xlane.f32.xlu0 %v1464_v22 }
 0x39d   :  { %v1341_v29 = vpop.xlane.xlu2 %1340 }
 0x39e   :  { %v1401_v36 = vmul.f32 %v3575_v20, %v1341_v29 }
 0x3a0   :  { %v3687_v13 = vsub.f32 %v3560_v53, %v1401_v36  ;;  %v1314_v54 = vpop.f32.mrf.mxu2 }
 0x3a2   :  { %v1465_v43 = vmul.f32 %v3687_v13, %v3687_v13 }
 0x3a4   :  { %1372 = vadd.xlane.f32.xlu0 %v3690_v21  ;;  %1507 = vadd.xlane.f32.xlu1 %v1465_v43 }
 0x3a5   :  { %v1343_v58 = vpop.xlane.xlu0 %1342 }
 0x3a6   :  { %v1402_v19 = vmul.f32 %v3575_v20, %v1343_v58 }
 0x3a8   :  { %v3697_v48 = vsub.f32 %v3564_v62, %v1402_v19  ;;  %v1317_v51 = vpop.f32.mrf.mxu2  ;;  %v2310_v62 = vld [vmem:[%s4037_s6] ss:$0 sm:$0xff] }
 0x3a9   :  { %v3712_v24 = vadd.f32 %v2310_v62, %v1317_v51  ;;  %v3725_v55 = vadd.f32 %v2310_v62, %v1311_v38  ;;  %v3734_v32 = vadd.f32 %v2310_v62, %v1314_v54 }
 0x3aa   :  { %v1466_v53 = vmul.f32 %v3697_v48, %v3697_v48 }
 0x3ac   :  { %1374 = vadd.xlane.f32.xlu1 %v3700_v14  ;;  %1509 = vadd.xlane.f32.xlu2 %v1466_v53 }
 0x3b4   :  { %1376 = vadd.xlane.f32.xlu2 %v3706_v52 }
 0x3b6   :  { %v1345_v49 = vpop.xlane.xlu1 %1344 }
 0x3b7   :  { %v1403_v33 = vmul.f32 %v3575_v20, %v1345_v49 }
 0x3b9   :  { %v3716_v56 = vsub.f32 %v3568_v9, %v1403_v33 }
 0x3bb   :  { %v1467_v39 = vmul.f32 %v3716_v56, %v3716_v56 }
 0x3bc   :  { %1382 = vadd.xlane.f32.xlu2 %v3712_v24 }
 0x3bd   :  { %1511 = vadd.xlane.f32.xlu0 %v1467_v39 }
 0x3be   :  { %v1347_v40 = vpop.xlane.xlu2 %1346 }
 0x3bf   :  { %v1404_v59 = vmul.f32 %v3575_v20, %v1347_v40 }
 0x3c1   :  { %v3723_v6 = vsub.f32 %v3572_v50, %v1404_v59 }
 0x3c3   :  { %v1468_v37 = vmul.f32 %v3723_v6, %v3723_v6 }
 0x3c5   :  { %1378 = vadd.xlane.f32.xlu0 %v3725_v55  ;;  %1513 = vadd.xlane.f32.xlu1 %v1468_v37 }
 0x3c6   :  { %v1353_v9 = vpop.xlane.xlu2 %1352  ;;  %v1349_v46 = vpop.xlane.xlu0 %1348 }
 0x3c7   :  { %v1405_v8 = vmul.f32 %v3575_v20, %v1349_v46  ;;  %v1407_v50 = vmul.f32 %v3575_v20, %v1353_v9 }
 0x3c9   :  { %v3732_v25 = vsub.f32 %v3583_v28, %v1405_v8  ;;  %v3741_v30 = vsub.f32 %v3578_v42, %v1407_v50 }
 0x3cb   :  { %v1469_v26 = vmul.f32 %v3732_v25, %v3732_v25  ;;  %v1471_v22 = vmul.f32 %v3741_v30, %v3741_v30 }
 0x3cd   :  { %1380 = vadd.xlane.f32.xlu1 %v3734_v32  ;;  %1515 = vadd.xlane.f32.xlu2 %v1469_v26 }
 0x3ce   :  { %v1492_v41 = vpop.xlane.xlu2 %1491  ;;  %v1488_v7 = vpop.xlane.xlu0 %1487 }
 0x3cf   :  { %v1553_v34 = vmul.f32 %v1492_v41, %v3575_v20  ;;  %v1551_v28 = vmul.f32 %v1488_v7, %v3575_v20 }
 0x3d1   :  { %v1585_v47 = vadd.f32 1e-05, %v1553_v34  ;;  %v1583_v12 = vadd.f32 1e-05, %v1551_v28 }
 0x3d3   :  { %2244 = vrsqrt.f32 %v1585_v47  ;;  %vm1641_vm11 = vweird.f32 %v1585_v47  ;;  %vm1621_vm13 = vweird.f32 %v1583_v12 }
 0x3d4   :  { %2246 = vrsqrt.f32 %v1583_v12 }
 0x3d5   :  { %v1351_v16 = vpop.xlane.xlu1 %1350  ;;  %1519 = vadd.xlane.f32.xlu1 %v1471_v22 }
 0x3d6   :  { %v1406_v17 = vmul.f32 %v3575_v20, %v1351_v16  ;;  %v1359_v42 = vpop.xlane.xlu2 %1358  ;;  %v1355_v36 = vpop.xlane.xlu0 %1354 }
 0x3d7   :  { %v1410_v43 = vmul.f32 %v3575_v20, %v1359_v42  ;;  %v1408_v38 = vmul.f32 %v3575_v20, %v1355_v36 }
 0x3d8   :  { %v3749_v29 = vsub.f32 %v3599_v1, %v1406_v17  ;;  %v3778_v17 = vld [vmem:[%s4038_s7] ss:$0 sm:$0xff] }
 0x3d9   :  { %v2245_v19 = vpop.eup %2244  ;;  %v3756_v53 = vsub.f32 %v3606_v61, %v1410_v43  ;;  %v3759_v54 = vsub.f32 %v3603_v3, %v1408_v38 }
 0x3da   :  { %v1470_v58 = vmul.f32 %v3749_v29, %v3749_v29  ;;  %v2247_v51 = vpop.eup %2246  ;;  %v1636_v1 = vmul.f32 %v2245_v19, %v1585_v47  ;;  %vm1642_vm9 = vweird.f32 %v2245_v19  ;;  %v3786_v47 = vld [vmem:[%s4039_s8] ss:$0 sm:$0xff] }
 0x3db   :  { %v1616_v62 = vmul.f32 %v2247_v51, %v1583_v12  ;;  %v1474_v33 = vmul.f32 %v3756_v53, %v3756_v53  ;;  %v1472_v39 = vmul.f32 %v3759_v54, %v3759_v54  ;;  %vm1622_vm10 = vweird.f32 %v2247_v51  ;;  %vm1643_vm12 = vmor %vm1641_vm11, %vm1642_vm9 }
 0x3dc   :  { %1517 = vadd.xlane.f32.xlu0 %v1470_v58  ;;  %v1637_v40 = vmul.f32 %v2245_v19, %v1636_v1  ;;  %vm1623_vm14 = vmor %vm1621_vm13, %vm1622_vm10 }
 0x3dd   :  { %v1490_v49 = vpop.xlane.xlu1 %1489  ;;  %v1617_v37 = vmul.f32 %v2247_v51, %v1616_v62  ;;  %1525 = vadd.xlane.f32.xlu1 %v1474_v33  ;;  %1521 = vadd.xlane.f32.xlu2 %v1472_v39 }
 0x3de   :  { %v1552_v59 = vmul.f32 %v1490_v49, %v3575_v20  ;;  %v1638_v61 = vmul.f32 0.5, %v1637_v40  ;;  %v1498_v9 = vpop.xlane.xlu2 %1497  ;;  %v1494_v46 = vpop.xlane.xlu0 %1493 }
 0x3df   :  { %v1618_v8 = vmul.f32 0.5, %v1617_v37  ;;  %v1556_v50 = vmul.f32 %v1498_v9, %v3575_v20  ;;  %v1554_v26 = vmul.f32 %v1494_v46, %v3575_v20 }
 0x3e0   :  { %v3766_v3 = vadd.f32 1e-05, %v1552_v59  ;;  %v1639_v41 = vsub.f32 1.5, %v1638_v61 }
 0x3e1   :  { %v1619_v7 = vsub.f32 1.5, %v1618_v8  ;;  %v3771_v34 = vadd.f32 1e-05, %v1556_v50  ;;  %v3773_v28 = vadd.f32 1e-05, %v1554_v26 }
 0x3e2   :  { %2248 = vrsqrt.f32 %v3766_v3  ;;  %v1640_v16 = vmul.f32 %v2245_v19, %v1639_v41  ;;  %vm1631_vm0 = vweird.f32 %v3766_v3 }
 0x3e3   :  { %v1620_v42 = vmul.f32 %v2247_v51, %v1619_v7  ;;  %2250 = vrsqrt.f32 %v3771_v34  ;;  %vm1671_vm5 = vweird.f32 %v3771_v34  ;;  %vm1651_vm7 = vweird.f32 %v3773_v28 }
 0x3e4   :  { %v1644_v36 = vsel %vm1643_vm12, %v2245_v19, %v1640_v16  ;;  %2252 = vrsqrt.f32 %v3773_v28 }
 0x3e5   :  { %v1357_v22 = vpop.xlane.xlu1 %1356  ;;  %v1937_v38 = vmul.f32 %v1644_v36, %v3591_v11  ;;  %v1624_v58 = vsel %vm1623_vm14, %v2247_v51, %v1620_v42 }
 0x3e6   :  { %v1409_v43 = vmul.f32 %v3575_v20, %v1357_v22  ;;  %v1935_v49 = vmul.f32 %v1624_v58, %v3588_v23  ;;  %v1365_v19 = vpop.xlane.xlu2 %1364  ;;  %v1361_v62 = vpop.xlane.xlu0 %1360 }
 0x3e7   :  { %v1973_v33 = vmul.f32 %v3778_v17, %v1937_v38  ;;  %v1413_v40 = vmul.f32 %v3575_v20, %v1365_v19  ;;  %v1411_v37 = vmul.f32 %v3575_v20, %v1361_v62 }
 0x3e8   :  { %v2249_v1 = vpop.eup %2248  ;;  %v3791_v12 = vsub.f32 %v3628_v35, %v1409_v43  ;;  %v1971_v59 = vmul.f32 %v3778_v17, %v1935_v49 }
 0x3e9   :  { %v1626_v39 = vmul.f32 %v2249_v1, %v3766_v3  ;;  %v2251_v51 = vpop.eup %2250  ;;  %v2009_v23 = vadd.f32 %v3786_v47, %v1973_v33  ;;  %v3802_v61 = vsub.f32 %v3636_v45, %v1413_v40  ;;  %v3807_v50 = vsub.f32 %v3633_v63, %v1411_v37 }
 0x3ea   :  { %v1473_v11 = vmul.f32 %v3791_v12, %v3791_v12  ;;  %v2253_v9 = vpop.eup %2252  ;;  %v2007_v46 = vadd.f32 %v3786_v47, %v1971_v59  ;;  %v1666_v8 = vmul.f32 %v2251_v51, %v3771_v34  ;;  %vm1632_vm15 = vweird.f32 %v2249_v1 }
 0x3eb   :  { %v1627_v35 = vmul.f32 %v2249_v1, %v1626_v39  ;;  %2041 = vst [vmem:[#allocation2 + $0x10] sm:$0xff] %v2009_v23  ;;  %v1646_v7 = vmul.f32 %v2253_v9, %v3773_v28  ;;  %v1477_v16 = vmul.f32 %v3802_v61, %v3802_v61  ;;  %v1475_v22 = vmul.f32 %v3807_v50, %v3807_v50  ;;  %vm1633_vm2 = vmor %vm1631_vm0, %vm1632_vm15 }
 0x3ec   :  { %1523 = vadd.xlane.f32.xlu0 %v1473_v11  ;;  %2039 = vst [vmem:[#allocation2] sm:$0xff] %v2007_v46  ;;  %v1667_v45 = vmul.f32 %v2251_v51, %v1666_v8  ;;  %vm1672_vm3 = vweird.f32 %v2251_v51  ;;  %vm1652_vm4 = vweird.f32 %v2253_v9 }
 0x3ed   :  { %v1496_v26 = vpop.xlane.xlu1 %1495  ;;  %v1628_v41 = vmul.f32 0.5, %v1627_v35  ;;  %v1647_v63 = vmul.f32 %v2253_v9, %v1646_v7  ;;  %1531 = vadd.xlane.f32.xlu1 %v1477_v16  ;;  %1527 = vadd.xlane.f32.xlu2 %v1475_v22  ;;  %vm1673_vm6 = vmor %vm1671_vm5, %vm1672_vm3 }
 0x3ee   :  { %v1555_v42 = vmul.f32 %v1496_v26, %v3575_v20  ;;  %v1668_v43 = vmul.f32 0.5, %v1667_v45  ;;  %v1504_v58 = vpop.xlane.xlu2 %1503  ;;  %v1500_v49 = vpop.xlane.xlu0 %1499  ;;  %vm1653_vm8 = vmor %vm1651_vm7, %vm1652_vm4 }
 0x3ef   :  { %v1629_v36 = vsub.f32 1.5, %v1628_v41  ;;  %v1648_v62 = vmul.f32 0.5, %v1647_v63  ;;  %v1559_v33 = vmul.f32 %v1504_v58, %v3575_v20  ;;  %v1557_v39 = vmul.f32 %v1500_v49, %v3575_v20 }
 0x3f0   :  { %v3816_v38 = vadd.f32 1e-05, %v1555_v42  ;;  %v1669_v40 = vsub.f32 1.5, %v1668_v43 }
 0x3f1   :  { %v1630_v19 = vmul.f32 %v2249_v1, %v1629_v36  ;;  %v1649_v3 = vsub.f32 1.5, %v1648_v62  ;;  %v3821_v37 = vadd.f32 1e-05, %v1559_v33  ;;  %v3823_v11 = vadd.f32 1e-05, %v1557_v39 }
 0x3f2   :  { %2254 = vrsqrt.f32 %v3816_v38  ;;  %v1670_v35 = vmul.f32 %v2251_v51, %v1669_v40  ;;  %vm1661_vm9 = vweird.f32 %v3816_v38 }
 0x3f3   :  { %v1634_v59 = vsel %vm1633_vm2, %v2249_v1, %v1630_v19  ;;  %v1650_v8 = vmul.f32 %v2253_v9, %v1649_v3  ;;  %2256 = vrsqrt.f32 %v3821_v37  ;;  %vm1701_vm13 = vweird.f32 %v3821_v37 }
 0x3f4   :  { %v1936_v23 = vmul.f32 %v1634_v59, %v3609_v15  ;;  %v1674_v1 = vsel %vm1673_vm6, %v2251_v51, %v1670_v35  ;;  %2258 = vrsqrt.f32 %v3823_v11  ;;  %vm1681_vm15 = vweird.f32 %v3823_v11 }
 0x3f5   :  { %v1363_v46 = vpop.xlane.xlu1 %1362  ;;  %v1940_v15 = vmul.f32 %v1674_v1, %v3619_v27  ;;  %v1654_v7 = vsel %vm1653_vm8, %v2253_v9, %v1650_v8 }
 0x3f6   :  { %v1972_v26 = vmul.f32 %v3778_v17, %v1936_v23  ;;  %v1412_v41 = vmul.f32 %v3575_v20, %v1363_v46  ;;  %v1938_v45 = vmul.f32 %v1654_v7, %v3616_v18  ;;  %v1371_v22 = vpop.xlane.xlu2 %1370  ;;  %v1367_v42 = vpop.xlane.xlu0 %1366 }
 0x3f7   :  { %v1976_v51 = vmul.f32 %v3778_v17, %v1940_v15  ;;  %v1416_v63 = vmul.f32 %v3575_v20, %v1371_v22  ;;  %v1414_v9 = vmul.f32 %v3575_v20, %v1367_v42 }
 0x3f8   :  { %v2255_v34 = vpop.eup %2254  ;;  %v2008_v16 = vadd.f32 %v3786_v47, %v1972_v26  ;;  %v3837_v28 = vsub.f32 %v3658_v0, %v1412_v41  ;;  %v1974_v27 = vmul.f32 %v3778_v17, %v1938_v45 }
 0x3f9   :  { %v1656_v36 = vmul.f32 %v2255_v34, %v3816_v38  ;;  %v2257_v18 = vpop.eup %2256  ;;  %v2012_v0 = vadd.f32 %v3786_v47, %v1976_v51  ;;  %v3848_v49 = vsub.f32 %v3666_v57, %v1416_v63  ;;  %v3853_v39 = vsub.f32 %v3663_v44, %v1414_v9 }
 0x3fa   :  { %2040 = vst [vmem:[#allocation2 + $0x8] sm:$0xff] %v2008_v16  ;;  %v1476_v43 = vmul.f32 %v3837_v28, %v3837_v28  ;;  %v2259_v19 = vpop.eup %2258  ;;  %v2010_v62 = vadd.f32 %v3786_v47, %v1974_v27  ;;  %v1696_v33 = vmul.f32 %v2257_v18, %v3821_v37  ;;  %vm1662_vm1 = vweird.f32 %v2255_v34 }
 0x3fb   :  { %v1657_v58 = vmul.f32 %v2255_v34, %v1656_v36  ;;  %2044 = vst [vmem:[#allocation2 + $0x28] sm:$0xff] %v2012_v0  ;;  %v1676_v3 = vmul.f32 %v2259_v19, %v3823_v11  ;;  %v1480_v23 = vmul.f32 %v3848_v49, %v3848_v49  ;;  %v1478_v35 = vmul.f32 %v3853_v39, %v3853_v39  ;;  %vm1663_vm10 = vmor %vm1661_vm9, %vm1662_vm1 }
 0x3fc   :  { %1529 = vadd.xlane.f32.xlu0 %v1476_v43  ;;  %2042 = vst [vmem:[#allocation2 + $0x18] sm:$0xff] %v2010_v62  ;;  %v1697_v57 = vmul.f32 %v2257_v18, %v1696_v33  ;;  %vm1702_vm11 = vweird.f32 %v2257_v18  ;;  %vm1682_vm12 = vweird.f32 %v2259_v19 }
 0x3fd   :  { %v1502_v40 = vpop.xlane.xlu1 %1501  ;;  %v1658_v59 = vmul.f32 0.5, %v1657_v58  ;;  %v1677_v44 = vmul.f32 %v2259_v19, %v1676_v3  ;;  %1537 = vadd.xlane.f32.xlu1 %v1480_v23  ;;  %1533 = vadd.xlane.f32.xlu2 %v1478_v35  ;;  %vm1703_vm14 = vmor %vm1701_vm13, %vm1702_vm11 }
 0x3fe   :  { %v1558_v46 = vmul.f32 %v1502_v40, %v3575_v20  ;;  %v1698_v26 = vmul.f32 0.5, %v1697_v57  ;;  %vm1683_vm0 = vmor %vm1681_vm15, %vm1682_vm12 }
 0x3ff   :  { %v1659_v8 = vsub.f32 1.5, %v1658_v59  ;;  %v1678_v15 = vmul.f32 0.5, %v1677_v44 }
 0x400   :  { %v1590_v1 = vadd.f32 1e-05, %v1558_v46  ;;  %v1699_v7 = vsub.f32 1.5, %v1698_v26 }
 0x401   :  { %v1660_v41 = vmul.f32 %v2255_v34, %v1659_v8  ;;  %v1679_v45 = vsub.f32 1.5, %v1678_v15 }
 0x402   :  { %2260 = vrsqrt.f32 %v1590_v1  ;;  %v1700_v42 = vmul.f32 %v2257_v18, %v1699_v7  ;;  %vm1691_vm3 = vweird.f32 %v1590_v1 }
 0x403   :  { %v1664_v16 = vsel %vm1663_vm10, %v2255_v34, %v1660_v41  ;;  %v1680_v36 = vmul.f32 %v2259_v19, %v1679_v45 }
 0x404   :  { %v1939_v22 = vmul.f32 %v1664_v16, %v3639_v31  ;;  %v1704_v27 = vsel %vm1703_vm14, %v2257_v18, %v1700_v42 }
 0x405   :  { %v1369_v51 = vpop.xlane.xlu1 %1368  ;;  %v1943_v34 = vmul.f32 %v1704_v27, %v3649_v2  ;;  %v1684_v9 = vsel %vm1683_vm0, %v2259_v19, %v1680_v36 }
 0x406   :  { %v1415_v38 = vmul.f32 %v3575_v20, %v1369_v51  ;;  %v1975_v63 = vmul.f32 %v3778_v17, %v1939_v22  ;;  %v1941_v0 = vmul.f32 %v1684_v9, %v3646_v10 }
 0x407   :  { %v1979_v58 = vmul.f32 %v3778_v17, %v1943_v34 }
 0x408   :  { %v3869_v43 = vsub.f32 %v3676_v60, %v1415_v38  ;;  %v2261_v31 = vpop.eup %2260  ;;  %v2011_v37 = vadd.f32 %v3786_v47, %v1975_v63  ;;  %v1977_v18 = vmul.f32 %v3778_v17, %v1941_v0 }
 0x409   :  { %v1686_v11 = vmul.f32 %v2261_v31, %v1590_v1  ;;  %v2015_v2 = vadd.f32 %v3786_v47, %v1979_v58  ;;  %vm1692_vm2 = vweird.f32 %v2261_v31 }
 0x40a   :  { %v1479_v62 = vmul.f32 %v3869_v43, %v3869_v43  ;;  %2043 = vst [vmem:[#allocation2 + $0x20] sm:$0xff] %v2011_v37  ;;  %v2013_v60 = vadd.f32 %v3786_v47, %v1977_v18  ;;  %vm1693_vm4 = vmor %vm1691_vm3, %vm1692_vm2 }
 0x40b   :  { %v1687_v19 = vmul.f32 %v2261_v31, %v1686_v11  ;;  %2047 = vst [vmem:[#allocation2 + $0x40] sm:$0xff] %v2015_v2 }
 0x40c   :  { %1535 = vadd.xlane.f32.xlu0 %v1479_v62  ;;  %2045 = vst [vmem:[#allocation2 + $0x30] sm:$0xff] %v2013_v60 }
 0x40d   :  { %v1688_v33 = vmul.f32 0.5, %v1687_v19 }
 0x40f   :  { %v1506_v40 = vpop.xlane.xlu0 %1505  ;;  %v1689_v10 = vsub.f32 1.5, %v1688_v33 }
 0x410   :  { %v1560_v59 = vmul.f32 %v1506_v40, %v3575_v20 }
 0x411   :  { %v1690_v3 = vmul.f32 %v2261_v31, %v1689_v10 }
 0x412   :  { %v1592_v23 = vadd.f32 1e-05, %v1560_v59 }
 0x413   :  { %v1694_v57 = vsel %vm1693_vm4, %v2261_v31, %v1690_v3 }
 0x414   :  { %2262 = vrsqrt.f32 %v1592_v23  ;;  %v1942_v35 = vmul.f32 %v1694_v57, %v3669_v4  ;;  %vm1711_vm6 = vweird.f32 %v1592_v23 }
 0x416   :  { %v1978_v46 = vmul.f32 %v3778_v17, %v1942_v35 }
 0x417   :  { %v1508_v8 = vpop.xlane.xlu1 %1507  ;;  %v1373_v44 = vpop.xlane.xlu0 %1372 }
 0x418   :  { %v1561_v26 = vmul.f32 %v1508_v8, %v3575_v20  ;;  %v1417_v41 = vmul.f32 %v3575_v20, %v1373_v44  ;;  %v2014_v15 = vadd.f32 %v3786_v47, %v1978_v46 }
 0x41a   :  { %v2263_v7 = vpop.eup %2262  ;;  %v1593_v16 = vadd.f32 1e-05, %v1561_v26  ;;  %v3886_v1 = vsub.f32 %v3690_v21, %v1417_v41  ;;  %2046 = vst [vmem:[#allocation2 + $0x38] sm:$0xff] %v2014_v15 }
 0x41b   :  { %v1706_v45 = vmul.f32 %v2263_v7, %v1592_v23  ;;  %vm1712_vm5 = vweird.f32 %v2263_v7 }
 0x41c   :  { %2264 = vrsqrt.f32 %v1593_v16  ;;  %v1481_v4 = vmul.f32 %v3886_v1, %v3886_v1  ;;  %vm1713_vm7 = vmor %vm1711_vm6, %vm1712_vm5  ;;  %vm1721_vm1 = vweird.f32 %v1593_v16 }
 0x41d   :  { %v1707_v22 = vmul.f32 %v2263_v7, %v1706_v45 }
 0x41e   :  { %1539 = vadd.xlane.f32.xlu2 %v1481_v4 }
 0x41f   :  { %v1708_v42 = vmul.f32 0.5, %v1707_v22  ;;  %v1375_v51 = vpop.xlane.xlu1 %1374  ;;  %v1510_v36 = vpop.xlane.xlu2 %1509 }
 0x420   :  { %v1418_v38 = vmul.f32 %v3575_v20, %v1375_v51  ;;  %v1562_v63 = vmul.f32 %v1510_v36, %v3575_v20 }
 0x421   :  { %v1709_v27 = vsub.f32 1.5, %v1708_v42 }
 0x422   :  { %v2265_v34 = vpop.eup %2264  ;;  %v3893_v21 = vsub.f32 %v3700_v14, %v1418_v38  ;;  %v1594_v9 = vadd.f32 1e-05, %v1562_v63 }
 0x423   :  { %v1710_v31 = vmul.f32 %v2263_v7, %v1709_v27  ;;  %v1716_v37 = vmul.f32 %v2265_v34, %v1593_v16  ;;  %vm1722_vm8 = vweird.f32 %v2265_v34 }
 0x424   :  { %2266 = vrsqrt.f32 %v1594_v9  ;;  %v1482_v0 = vmul.f32 %v3893_v21, %v3893_v21  ;;  %vm1723_vm9 = vmor %vm1721_vm1, %vm1722_vm8  ;;  %vm1731_vm11 = vweird.f32 %v1594_v9 }
 0x425   :  { %v1714_v58 = vsel %vm1713_vm7, %v2263_v7, %v1710_v31  ;;  %v1717_v11 = vmul.f32 %v2265_v34, %v1716_v37 }
 0x426   :  { %v1944_v62 = vmul.f32 %v1714_v58, %v3681_v5  ;;  %1541 = vadd.xlane.f32.xlu0 %v1482_v0 }
 0x427   :  { %v1718_v18 = vmul.f32 0.5, %v1717_v11  ;;  %v1377_v2 = vpop.xlane.xlu2 %1376 }
 0x428   :  { %v1980_v19 = vmul.f32 %v3778_v17, %v1944_v62  ;;  %v1419_v14 = vmul.f32 %v3575_v20, %v1377_v2 }
 0x429   :  { %v1719_v60 = vsub.f32 1.5, %v1718_v18 }
 0x42a   :  { %v2267_v33 = vpop.eup %2266  ;;  %v2016_v40 = vadd.f32 %v3786_v47, %v1980_v19  ;;  %v3902_v10 = vsub.f32 %v3706_v52, %v1419_v14 }
 0x42b   :  { %v1720_v59 = vmul.f32 %v2265_v34, %v1719_v60  ;;  %v1726_v3 = vmul.f32 %v2267_v33, %v1594_v9  ;;  %vm1732_vm10 = vweird.f32 %v2267_v33 }
 0x42c   :  { %2048 = vst [vmem:[#allocation2 + $0x48] sm:$0xff] %v2016_v40  ;;  %v1483_v5 = vmul.f32 %v3902_v10, %v3902_v10  ;;  %vm1733_vm12 = vmor %vm1731_vm11, %vm1732_vm10 }
 0x42d   :  { %v1724_v23 = vsel %vm1723_vm9, %v2265_v34, %v1720_v59  ;;  %v1727_v57 = vmul.f32 %v2267_v33, %v1726_v3 }
 0x42e   :  { %v1945_v35 = vmul.f32 %v1724_v23, %v3687_v13  ;;  %1543 = vadd.xlane.f32.xlu1 %v1483_v5 }
 0x42f   :  { %v1728_v46 = vmul.f32 0.5, %v1727_v57  ;;  %v1383_v8 = vpop.xlane.xlu2 %1382 }
 0x430   :  { %v1981_v44 = vmul.f32 %v3778_v17, %v1945_v35  ;;  %v1422_v52 = vmul.f32 %v3575_v20, %v1383_v8  ;;  %v1512_v16 = vpop.xlane.xlu0 %1511 }
 0x431   :  { %v1729_v26 = vsub.f32 1.5, %v1728_v46  ;;  %v1563_v13 = vmul.f32 %v1512_v16, %v3575_v20 }
 0x432   :  { %v2017_v41 = vadd.f32 %v3786_v47, %v1981_v44  ;;  %v3911_v15 = vsub.f32 %v3712_v24, %v1422_v52 }
 0x433   :  { %v1730_v7 = vmul.f32 %v2267_v33, %v1729_v26  ;;  %v1595_v42 = vadd.f32 1e-05, %v1563_v13 }
 0x434   :  { %2049 = vst [vmem:[#allocation2 + $0x50] sm:$0xff] %v2017_v41  ;;  %v1486_v45 = vmul.f32 %v3911_v15, %v3911_v15 }
 0x435   :  { %v1734_v4 = vsel %vm1733_vm12, %v2267_v33, %v1730_v7  ;;  %2268 = vrsqrt.f32 %v1595_v42  ;;  %vm1741_vm14 = vweird.f32 %v1595_v42 }
 0x436   :  { %v1946_v22 = vmul.f32 %v1734_v4, %v3697_v48  ;;  %1549 = vadd.xlane.f32.xlu1 %v1486_v45 }
 0x438   :  { %v1982_v51 = vmul.f32 %v3778_v17, %v1946_v22  ;;  %v1514_v36 = vpop.xlane.xlu1 %1513  ;;  %v1379_v38 = vpop.xlane.xlu0 %1378 }
 0x439   :  { %v1564_v63 = vmul.f32 %v1514_v36, %v3575_v20  ;;  %v1420_v27 = vmul.f32 %v3575_v20, %v1379_v38 }
 0x43a   :  { %v2018_v24 = vadd.f32 %v3786_v47, %v1982_v51 }
 0x43b   :  { %v2269_v34 = vpop.eup %2268  ;;  %v1596_v9 = vadd.f32 1e-05, %v1564_v63  ;;  %v3922_v31 = vsub.f32 %v3725_v55, %v1420_v27 }
 0x43c   :  { %2050 = vst [vmem:[#allocation2 + $0x58] sm:$0xff] %v2018_v24  ;;  %v1736_v48 = vmul.f32 %v2269_v34, %v1595_v42  ;;  %vm1742_vm13 = vweird.f32 %v2269_v34 }
 0x43d   :  { %2270 = vrsqrt.f32 %v1596_v9  ;;  %v1484_v37 = vmul.f32 %v3922_v31, %v3922_v31  ;;  %vm1743_vm15 = vmor %vm1741_vm14, %vm1742_vm13  ;;  %vm1751_vm2 = vweird.f32 %v1596_v9 }
 0x43e   :  { %v1737_v0 = vmul.f32 %v2269_v34, %v1736_v48 }
 0x43f   :  { %1545 = vadd.xlane.f32.xlu2 %v1484_v37 }
 0x440   :  { %v1738_v58 = vmul.f32 0.5, %v1737_v0  ;;  %v1381_v11 = vpop.xlane.xlu1 %1380  ;;  %v1516_v62 = vpop.xlane.xlu2 %1515 }
 0x441   :  { %v1421_v18 = vmul.f32 %v3575_v20, %v1381_v11  ;;  %v1565_v2 = vmul.f32 %v1516_v62, %v3575_v20 }
 0x442   :  { %v1739_v19 = vsub.f32 1.5, %v1738_v58 }
 0x443   :  { %v2271_v14 = vpop.eup %2270  ;;  %v3929_v55 = vsub.f32 %v3734_v32, %v1421_v18  ;;  %v1597_v60 = vadd.f32 1e-05, %v1565_v2 }
 0x444   :  { %v1740_v33 = vmul.f32 %v2269_v34, %v1739_v19  ;;  %v1746_v40 = vmul.f32 %v2271_v14, %v1596_v9  ;;  %vm1752_vm0 = vweird.f32 %v2271_v14 }
 0x445   :  { %2272 = vrsqrt.f32 %v1597_v60  ;;  %v1485_v59 = vmul.f32 %v3929_v55, %v3929_v55  ;;  %vm1753_vm3 = vmor %vm1751_vm2, %vm1752_vm0  ;;  %vm1761_vm5 = vweird.f32 %v1597_v60 }
 0x446   :  { %v1744_v3 = vsel %vm1743_vm15, %v2269_v34, %v1740_v33  ;;  %v1747_v5 = vmul.f32 %v2271_v14, %v1746_v40 }
 0x447   :  { %v1947_v23 = vmul.f32 %v1744_v3, %v3716_v56  ;;  %1547 = vadd.xlane.f32.xlu0 %v1485_v59 }
 0x448   :  { %v1748_v57 = vmul.f32 0.5, %v1747_v5  ;;  %v1520_v35 = vpop.xlane.xlu1 %1519 }
 0x449   :  { %v1983_v46 = vmul.f32 %v3778_v17, %v1947_v23  ;;  %v1567_v32 = vmul.f32 %v1520_v35, %v3575_v20 }
 0x44a   :  { %v1749_v8 = vsub.f32 1.5, %v1748_v57 }
 0x44b   :  { %v2273_v44 = vpop.eup %2272  ;;  %v2019_v52 = vadd.f32 %v3786_v47, %v1983_v46  ;;  %v1599_v26 = vadd.f32 1e-05, %v1567_v32 }
 0x44c   :  { %v1750_v41 = vmul.f32 %v2271_v14, %v1749_v8  ;;  %v1756_v7 = vmul.f32 %v2273_v44, %v1597_v60  ;;  %vm1762_vm4 = vweird.f32 %v2273_v44 }
 0x44d   :  { %2051 = vst [vmem:[#allocation2 + $0x60] sm:$0xff] %v2019_v52  ;;  %2274 = vrsqrt.f32 %v1599_v26  ;;  %vm1763_vm6 = vmor %vm1761_vm5, %vm1762_vm4  ;;  %vm1781_vm8 = vweird.f32 %v1599_v26 }
 0x44e   :  { %v1754_v13 = vsel %vm1753_vm3, %v2271_v14, %v1750_v41  ;;  %v1757_v45 = vmul.f32 %v2273_v44, %v1756_v7 }
 0x44f   :  { %v1518_v16 = vpop.xlane.xlu0 %1517  ;;  %v1948_v4 = vmul.f32 %v1754_v13, %v3723_v6 }
 0x450   :  { %v1566_v56 = vmul.f32 %v1518_v16, %v3575_v20  ;;  %v1758_v42 = vmul.f32 0.5, %v1757_v45  ;;  %v1526_v51 = vpop.xlane.xlu1 %1525  ;;  %v1522_v24 = vpop.xlane.xlu2 %1521 }
 0x451   :  { %v1984_v36 = vmul.f32 %v3778_v17, %v1948_v4  ;;  %v1570_v38 = vmul.f32 %v1526_v51, %v3575_v20  ;;  %v1568_v63 = vmul.f32 %v1522_v24, %v3575_v20 }
 0x452   :  { %v1598_v22 = vadd.f32 1e-05, %v1566_v56  ;;  %v1759_v27 = vsub.f32 1.5, %v1758_v42 }
 0x453   :  { %v2275_v34 = vpop.eup %2274  ;;  %v2020_v9 = vadd.f32 %v3786_v47, %v1984_v36  ;;  %v1602_v48 = vadd.f32 1e-05, %v1570_v38  ;;  %v3943_v37 = vadd.f32 1e-05, %v1568_v63 }
 0x454   :  { %2276 = vrsqrt.f32 %v1598_v22  ;;  %v1760_v6 = vmul.f32 %v2273_v44, %v1759_v27  ;;  %v1776_v0 = vmul.f32 %v2275_v34, %v1599_v26  ;;  %vm1782_vm7 = vweird.f32 %v2275_v34 }
 0x455   :  { %2052 = vst [vmem:[#allocation2 + $0x68] sm:$0xff] %v2020_v9  ;;  %2278 = vrsqrt.f32 %v1602_v48  ;;  %vm1783_vm1 = vmor %vm1781_vm8, %vm1782_vm7  ;;  %vm1771_vm10 = vweird.f32 %v1598_v22  ;;  %vm1811_vm14 = vweird.f32 %v1602_v48  ;;  %vm1791_vm0 = vweird.f32 %v3943_v37 }
 0x456   :  { %v1764_v58 = vsel %vm1763_vm6, %v2273_v44, %v1760_v6  ;;  %v1777_v11 = vmul.f32 %v2275_v34, %v1776_v0  ;;  %2280 = vrsqrt.f32 %v3943_v37 }
 0x457   :  { %v1949_v18 = vmul.f32 %v1764_v58, %v3732_v25 }
 0x458   :  { %v1778_v2 = vmul.f32 0.5, %v1777_v11 }
 0x459   :  { %v1985_v14 = vmul.f32 %v3778_v17, %v1949_v18 }
 0x45a   :  { %v2277_v62 = vpop.eup %2276  ;;  %v1779_v33 = vsub.f32 1.5, %v1778_v2 }
 0x45b   :  { %v1766_v19 = vmul.f32 %v2277_v62, %v1598_v22  ;;  %v2279_v59 = vpop.eup %2278  ;;  %v2021_v60 = vadd.f32 %v3786_v47, %v1985_v14  ;;  %vm1772_vm9 = vweird.f32 %v2277_v62 }
 0x45c   :  { %v2281_v3 = vpop.eup %2280  ;;  %v1780_v5 = vmul.f32 %v2275_v34, %v1779_v33  ;;  %v1806_v23 = vmul.f32 %v2279_v59, %v1602_v48  ;;  %vm1812_vm11 = vweird.f32 %v2279_v59  ;;  %vm1773_vm13 = vmor %vm1771_vm10, %vm1772_vm9 }
 0x45d   :  { %v1767_v40 = vmul.f32 %v2277_v62, %v1766_v19  ;;  %2053 = vst [vmem:[#allocation2 + $0x70] sm:$0xff] %v2021_v60  ;;  %v1786_v35 = vmul.f32 %v2281_v3, %v3943_v37  ;;  %vm1792_vm12 = vweird.f32 %v2281_v3  ;;  %vm1813_vm15 = vmor %vm1811_vm14, %vm1812_vm11 }
 0x45e   :  { %v1784_v46 = vsel %vm1783_vm1, %v2275_v34, %v1780_v5  ;;  %v1807_v32 = vmul.f32 %v2279_v59, %v1806_v23  ;;  %vm1793_vm2 = vmor %vm1791_vm0, %vm1792_vm12 }
 0x45f   :  { %v1768_v57 = vmul.f32 0.5, %v1767_v40  ;;  %v1524_v25 = vpop.xlane.xlu0 %1523  ;;  %v1951_v52 = vmul.f32 %v1784_v46, %v3741_v30  ;;  %v1787_v41 = vmul.f32 %v2281_v3, %v1786_v35 }
 0x460   :  { %v1569_v44 = vmul.f32 %v1524_v25, %v3575_v20  ;;  %v1808_v7 = vmul.f32 0.5, %v1807_v32  ;;  %v1532_v16 = vpop.xlane.xlu1 %1531  ;;  %v1528_v42 = vpop.xlane.xlu2 %1527 }
 0x461   :  { %v1769_v8 = vsub.f32 1.5, %v1768_v57  ;;  %v1987_v13 = vmul.f32 %v3778_v17, %v1951_v52  ;;  %v1788_v45 = vmul.f32 0.5, %v1787_v41  ;;  %v1573_v4 = vmul.f32 %v1532_v16, %v3575_v20 }
 0x462   :  { %v1601_v56 = vadd.f32 1e-05, %v1569_v44  ;;  %v1809_v51 = vsub.f32 1.5, %v1808_v7  ;;  %v1571_v30 = vmul.f32 %v1528_v42, %v3575_v20 }
 0x463   :  { %v1770_v26 = vmul.f32 %v2277_v62, %v1769_v8  ;;  %v2023_v22 = vadd.f32 %v3786_v47, %v1987_v13  ;;  %v1789_v36 = vsub.f32 1.5, %v1788_v45  ;;  %v1605_v63 = vadd.f32 1e-05, %v1573_v4 }
 0x464   :  { %2282 = vrsqrt.f32 %v1601_v56  ;;  %v1810_v27 = vmul.f32 %v2279_v59, %v1809_v51  ;;  %v1603_v34 = vadd.f32 1e-05, %v1571_v30  ;;  %vm1801_vm4 = vweird.f32 %v1601_v56 }
 0x465   :  { %v1774_v24 = vsel %vm1773_vm13, %v2277_v62, %v1770_v26  ;;  %2055 = vst [vmem:[#allocation2 + $0x80] sm:$0xff] %v2023_v22  ;;  %v1790_v9 = vmul.f32 %v2281_v3, %v1789_v36  ;;  %2284 = vrsqrt.f32 %v1605_v63  ;;  %vm1841_vm8 = vweird.f32 %v1605_v63 }
 0x466   :  { %v1950_v38 = vmul.f32 %v1774_v24, %v3749_v29  ;;  %v1814_v0 = vsel %vm1813_vm15, %v2279_v59, %v1810_v27  ;;  %2286 = vrsqrt.f32 %v1603_v34  ;;  %vm1821_vm9 = vweird.f32 %v1603_v34 }
 0x467   :  { %v1954_v58 = vmul.f32 %v1814_v0, %v3756_v53  ;;  %v1794_v29 = vsel %vm1793_vm2, %v2281_v3, %v1790_v9 }
 0x468   :  { %v1986_v6 = vmul.f32 %v3778_v17, %v1950_v38  ;;  %v1952_v62 = vmul.f32 %v1794_v29, %v3759_v54 }
 0x469   :  { %v1990_v18 = vmul.f32 %v3778_v17, %v1954_v58 }
 0x46a   :  { %v2022_v11 = vadd.f32 %v3786_v47, %v1986_v6  ;;  %v2283_v48 = vpop.eup %2282  ;;  %v1988_v37 = vmul.f32 %v3778_v17, %v1952_v62 }
 0x46b   :  { %v1796_v2 = vmul.f32 %v2283_v48, %v1601_v56  ;;  %v2285_v19 = vpop.eup %2284  ;;  %v2026_v14 = vadd.f32 %v3786_v47, %v1990_v18  ;;  %vm1802_vm3 = vweird.f32 %v2283_v48 }
 0x46c   :  { %2054 = vst [vmem:[#allocation2 + $0x78] sm:$0xff] %v2022_v11  ;;  %v2287_v40 = vpop.eup %2286  ;;  %v2024_v59 = vadd.f32 %v3786_v47, %v1988_v37  ;;  %v1836_v53 = vmul.f32 %v2285_v19, %v1605_v63  ;;  %vm1842_vm5 = vweird.f32 %v2285_v19  ;;  %vm1803_vm6 = vmor %vm1801_vm4, %vm1802_vm3 }
 0x46d   :  { %v1797_v33 = vmul.f32 %v2283_v48, %v1796_v2  ;;  %2058 = vst [vmem:[#allocation2 + $0x98] sm:$0xff] %v2026_v14  ;;  %v1816_v60 = vmul.f32 %v2287_v40, %v1603_v34  ;;  %vm1822_vm7 = vweird.f32 %v2287_v40  ;;  %vm1843_vm1 = vmor %vm1841_vm8, %vm1842_vm5 }
 0x46e   :  { %2056 = vst [vmem:[#allocation2 + $0x88] sm:$0xff] %v2024_v59  ;;  %v1837_v54 = vmul.f32 %v2285_v19, %v1836_v53  ;;  %vm1823_vm10 = vmor %vm1821_vm9, %vm1822_vm7 }
 0x46f   :  { %v1798_v3 = vmul.f32 0.5, %v1797_v33  ;;  %v1530_v5 = vpop.xlane.xlu0 %1529  ;;  %v1817_v57 = vmul.f32 %v2287_v40, %v1816_v60 }
 0x470   :  { %v1572_v23 = vmul.f32 %v1530_v5, %v3575_v20  ;;  %v1838_v25 = vmul.f32 0.5, %v1837_v54  ;;  %v1538_v46 = vpop.xlane.xlu1 %1537  ;;  %v1534_v41 = vpop.xlane.xlu2 %1533 }
 0x471   :  { %v1799_v35 = vsub.f32 1.5, %v1798_v3  ;;  %v1818_v8 = vmul.f32 0.5, %v1817_v57  ;;  %v1576_v52 = vmul.f32 %v1538_v46, %v3575_v20  ;;  %v1574_v26 = vmul.f32 %v1534_v41, %v3575_v20 }
 0x472   :  { %v1604_v32 = vadd.f32 1e-05, %v1572_v23  ;;  %v1839_v7 = vsub.f32 1.5, %v1838_v25 }
 0x473   :  { %v1800_v44 = vmul.f32 %v2283_v48, %v1799_v35  ;;  %v1819_v16 = vsub.f32 1.5, %v1818_v8  ;;  %v1608_v45 = vadd.f32 1e-05, %v1576_v52  ;;  %v1606_v51 = vadd.f32 1e-05, %v1574_v26 }
 0x474   :  { %2288 = vrsqrt.f32 %v1604_v32  ;;  %v1840_v4 = vmul.f32 %v2285_v19, %v1839_v7  ;;  %vm1831_vm12 = vweird.f32 %v1604_v32 }
 0x475   :  { %v1804_v13 = vsel %vm1803_vm6, %v2283_v48, %v1800_v44  ;;  %v1820_v56 = vmul.f32 %v2287_v40, %v1819_v16  ;;  %2290 = vrsqrt.f32 %v1608_v45  ;;  %vm1871_vm0 = vweird.f32 %v1608_v45 }
 0x476   :  { %v1953_v42 = vmul.f32 %v1804_v13, %v3791_v12  ;;  %v1844_v24 = vsel %vm1843_vm1, %v2285_v19, %v1840_v4  ;;  %2292 = vrsqrt.f32 %v1606_v51  ;;  %vm1851_vm3 = vweird.f32 %v1606_v51 }
 0x477   :  { %v1957_v22 = vmul.f32 %v1844_v24, %v3802_v61  ;;  %v1824_v36 = vsel %vm1823_vm10, %v2287_v40, %v1820_v56 }
 0x478   :  { %v1989_v30 = vmul.f32 %v3778_v17, %v1953_v42  ;;  %v1955_v27 = vmul.f32 %v1824_v36, %v3807_v50 }
 0x479   :  { %v1993_v12 = vmul.f32 %v3778_v17, %v1957_v22 }
 0x47a   :  { %v2289_v38 = vpop.eup %2288  ;;  %v2025_v63 = vadd.f32 %v3786_v47, %v1989_v30  ;;  %v1991_v6 = vmul.f32 %v3778_v17, %v1955_v27 }
 0x47b   :  { %v1826_v9 = vmul.f32 %v2289_v38, %v1604_v32  ;;  %v2291_v34 = vpop.eup %2290  ;;  %v2029_v0 = vadd.f32 %v3786_v47, %v1993_v12  ;;  %vm1832_vm11 = vweird.f32 %v2289_v38 }
 0x47c   :  { %2057 = vst [vmem:[#allocation2 + $0x90] sm:$0xff] %v2025_v63  ;;  %v2293_v29 = vpop.eup %2292  ;;  %v2027_v11 = vadd.f32 %v3786_v47, %v1991_v6  ;;  %v1866_v61 = vmul.f32 %v2291_v34, %v1608_v45  ;;  %vm1872_vm13 = vweird.f32 %v2291_v34  ;;  %vm1833_vm14 = vmor %vm1831_vm12, %vm1832_vm11 }
 0x47d   :  { %v1827_v58 = vmul.f32 %v2289_v38, %v1826_v9  ;;  %2061 = vst [vmem:[#allocation2 + $0xb0] sm:$0xff] %v2029_v0  ;;  %v1846_v62 = vmul.f32 %v2293_v29, %v1606_v51  ;;  %vm1852_vm15 = vweird.f32 %v2293_v29  ;;  %vm1873_vm2 = vmor %vm1871_vm0, %vm1872_vm13 }
 0x47e   :  { %2059 = vst [vmem:[#allocation2 + $0xa0] sm:$0xff] %v2027_v11  ;;  %v1867_v2 = vmul.f32 %v2291_v34, %v1866_v61  ;;  %vm1853_vm4 = vmor %vm1851_vm3, %vm1852_vm15 }
 0x47f   :  { %v1536_v48 = vpop.xlane.xlu0 %1535  ;;  %v1828_v50 = vmul.f32 0.5, %v1827_v58  ;;  %v1847_v37 = vmul.f32 %v2293_v29, %v1846_v62 }
 0x480   :  { %v1575_v18 = vmul.f32 %v1536_v48, %v3575_v20  ;;  %v1868_v33 = vmul.f32 0.5, %v1867_v2 }
 0x481   :  { %v1829_v19 = vsub.f32 1.5, %v1828_v50  ;;  %v1848_v40 = vmul.f32 0.5, %v1847_v37  ;;  %v4001_v50 = vld [vmem:[%s4038_s7] ss:$0 sm:$0xff]  ;;  %s2341_s7 = smov [#allocation2]  }
 0x482   :  { %v1607_v14 = vadd.f32 1e-05, %v1575_v18  ;;  %v1869_v53 = vsub.f32 1.5, %v1868_v33 }
 0x483   :  { %v1830_v59 = vmul.f32 %v2289_v38, %v1829_v19  ;;  %v1849_v60 = vsub.f32 1.5, %v1848_v40 }
 0x484   :  { %2294 = vrsqrt.f32 %v1607_v14  ;;  %v1870_v5 = vmul.f32 %v2291_v34, %v1869_v53  ;;  %vm1861_vm6 = vweird.f32 %v1607_v14 }
 0x485   :  { %v1834_v3 = vsel %vm1833_vm14, %v2289_v38, %v1830_v59  ;;  %v1850_v23 = vmul.f32 %v2293_v29, %v1849_v60 }
 0x486   :  { %v1956_v54 = vmul.f32 %v1834_v3, %v3837_v28  ;;  %v1874_v57 = vsel %vm1873_vm2, %v2291_v34, %v1870_v5 }
 0x487   :  { %v1960_v46 = vmul.f32 %v1874_v57, %v3848_v49  ;;  %v1854_v32 = vsel %vm1853_vm4, %v2293_v29, %v1850_v23 }
 0x488   :  { %v1992_v35 = vmul.f32 %v3778_v17, %v1956_v54  ;;  %v1958_v8 = vmul.f32 %v1854_v32, %v3853_v39 }
 0x489   :  { %v1996_v41 = vmul.f32 %v3778_v17, %v1960_v46 }
 0x48a   :  { %v2295_v25 = vpop.eup %2294  ;;  %v2028_v44 = vadd.f32 %v3786_v47, %v1992_v35  ;;  %v1994_v28 = vmul.f32 %v3778_v17, %v1958_v8 }
 0x48b   :  { %v1856_v52 = vmul.f32 %v2295_v25, %v1607_v14  ;;  %v2032_v26 = vadd.f32 %v3786_v47, %v1996_v41  ;;  %vm1862_vm5 = vweird.f32 %v2295_v25  ;;  %v4008_v14 = vld [vmem:[%s4039_s8] ss:$0 sm:$0xff]  ;;  %s2075_s8 = sshll.u32 %s2341_s7, 4  ;;  %s2076_s8 = int_to_ptr.vmem [resolvable:$true] %s2075_s8 }
 0x48c   :  { %2060 = vst [vmem:[#allocation2 + $0xa8] sm:$0xff] %v2028_v44  ;;  %v2030_v16 = vadd.f32 %v3786_v47, %v1994_v28  ;;  %vm1863_vm7 = vmor %vm1861_vm6, %vm1862_vm5 }
 0x48d   :  { %v1857_v7 = vmul.f32 %v2295_v25, %v1856_v52  ;;  %2064 = vst [vmem:[#allocation2 + $0xc8] sm:$0xff] %v2032_v26 }
 0x48e   :  { %2062 = vst [vmem:[#allocation2 + $0xb8] sm:$0xff] %v2030_v16 }
 0x48f   :  { %v1858_v13 = vmul.f32 0.5, %v1857_v7 }
 0x491   :  { %v1859_v49 = vsub.f32 1.5, %v1858_v13  ;;  %v1540_v45 = vpop.xlane.xlu2 %1539 }
 0x492   :  { %v1577_v39 = vmul.f32 %v1540_v45, %v3575_v20 }
 0x493   :  { %v1860_v4 = vmul.f32 %v2295_v25, %v1859_v49 }
 0x494   :  { %v1609_v42 = vadd.f32 1e-05, %v1577_v39 }
 0x495   :  { %v1864_v51 = vsel %vm1863_vm7, %v2295_v25, %v1860_v4 }
 0x496   :  { %v1959_v56 = vmul.f32 %v1864_v51, %v3869_v43  ;;  %2296 = vrsqrt.f32 %v1609_v42  ;;  %vm1881_vm1 = vweird.f32 %v1609_v42 }
 0x498   :  { %v1995_v24 = vmul.f32 %v3778_v17, %v1959_v56 }
 0x499   :  { %v1542_v30 = vpop.xlane.xlu0 %1541 }
 0x49a   :  { %v2031_v22 = vadd.f32 %v3786_v47, %v1995_v24  ;;  %v1578_v36 = vmul.f32 %v1542_v30, %v3575_v20 }
 0x49c   :  { %v2297_v38 = vpop.eup %2296  ;;  %2063 = vst [vmem:[#allocation2 + $0xc0] sm:$0xff] %v2031_v22  ;;  %v1610_v27 = vadd.f32 1e-05, %v1578_v36 }
 0x49d   :  { %v1876_v63 = vmul.f32 %v2297_v38, %v1609_v42  ;;  %vm1882_vm8 = vweird.f32 %v2297_v38 }
 0x49e   :  { %2298 = vrsqrt.f32 %v1610_v27  ;;  %vm1883_vm9 = vmor %vm1881_vm1, %vm1882_vm8  ;;  %vm1891_vm11 = vweird.f32 %v1610_v27 }
 0x49f   :  { %v1877_v12 = vmul.f32 %v2297_v38, %v1876_v63 }
 0x4a1   :  { %v1878_v9 = vmul.f32 0.5, %v1877_v12  ;;  %v1544_v6 = vpop.xlane.xlu1 %1543 }
 0x4a2   :  { %v1579_v34 = vmul.f32 %v1544_v6, %v3575_v20 }
 0x4a3   :  { %v1879_v0 = vsub.f32 1.5, %v1878_v9 }
 0x4a4   :  { %v2299_v43 = vpop.eup %2298  ;;  %v1611_v58 = vadd.f32 1e-05, %v1579_v34 }
 0x4a5   :  { %v1880_v17 = vmul.f32 %v2297_v38, %v1879_v0  ;;  %v1886_v29 = vmul.f32 %v2299_v43, %v1610_v27  ;;  %vm1892_vm10 = vweird.f32 %v2299_v43 }
 0x4a6   :  { %2300 = vrsqrt.f32 %v1611_v58  ;;  %vm1893_vm12 = vmor %vm1891_vm11, %vm1892_vm10  ;;  %vm1901_vm14 = vweird.f32 %v1611_v58 }
 0x4a7   :  { %v1884_v47 = vsel %vm1883_vm9, %v2297_v38, %v1880_v17  ;;  %v1887_v11 = vmul.f32 %v2299_v43, %v1886_v29 }
 0x4a8   :  { %v1961_v61 = vmul.f32 %v1884_v47, %v3886_v1 }
 0x4a9   :  { %v1888_v48 = vmul.f32 0.5, %v1887_v11  ;;  %v1550_v62 = vpop.xlane.xlu1 %1549 }
 0x4aa   :  { %v1997_v18 = vmul.f32 %v4001_v50, %v1961_v61  ;;  %v1582_v2 = vmul.f32 %v1550_v62, %v3575_v20 }
 0x4ab   :  { %v1889_v37 = vsub.f32 1.5, %v1888_v48 }
 0x4ac   :  { %v2301_v19 = vpop.eup %2300  ;;  %v2033_v1 = vadd.f32 %v4008_v14, %v1997_v18  ;;  %v1614_v33 = vadd.f32 1e-05, %v1582_v2 }
 0x4ad   :  { %v1890_v40 = vmul.f32 %v2299_v43, %v1889_v37  ;;  %v1896_v59 = vmul.f32 %v2301_v19, %v1611_v58  ;;  %vm1902_vm13 = vweird.f32 %v2301_v19 }
 0x4ae   :  { %2065 = vst [vmem:[#allocation2 + $0xd0] sm:$0xff] %v2033_v1  ;;  %2302 = vrsqrt.f32 %v1614_v33  ;;  %vm1903_vm15 = vmor %vm1901_vm14, %vm1902_vm13  ;;  %vm1931_vm2 = vweird.f32 %v1614_v33 }
 0x4af   :  { %v1894_v53 = vsel %vm1893_vm12, %v2299_v43, %v1890_v40  ;;  %v1897_v60 = vmul.f32 %v2301_v19, %v1896_v59 }
 0x4b0   :  { %v1962_v3 = vmul.f32 %v1894_v53, %v3893_v21 }
 0x4b1   :  { %v1898_v5 = vmul.f32 0.5, %v1897_v60 }
 0x4b2   :  { %v1998_v54 = vmul.f32 %v4001_v50, %v1962_v3  ;;  %v1546_v32 = vpop.xlane.xlu2 %1545 }
 0x4b3   :  { %v1899_v23 = vsub.f32 1.5, %v1898_v5  ;;  %v1580_v8 = vmul.f32 %v1546_v32, %v3575_v20 }
 0x4b4   :  { %v2303_v57 = vpop.eup %2302  ;;  %v2034_v35 = vadd.f32 %v4008_v14, %v1998_v54 }
 0x4b5   :  { %v1900_v25 = vmul.f32 %v2301_v19, %v1899_v23  ;;  %v1926_v46 = vmul.f32 %v2303_v57, %v1614_v33  ;;  %v1612_v41 = vadd.f32 1e-05, %v1580_v8  ;;  %vm1932_vm0 = vweird.f32 %v2303_v57 }
 0x4b6   :  { %2066 = vst [vmem:[#allocation2 + $0xd8] sm:$0xff] %v2034_v35  ;;  %vm1933_vm3 = vmor %vm1931_vm2, %vm1932_vm0 }
 0x4b7   :  { %v1904_v44 = vsel %vm1903_vm15, %v2301_v19, %v1900_v25  ;;  %v1927_v52 = vmul.f32 %v2303_v57, %v1926_v46  ;;  %2304 = vrsqrt.f32 %v1612_v41  ;;  %vm1911_vm5 = vweird.f32 %v1612_v41 }
 0x4b8   :  { %v1963_v21 = vmul.f32 %v1904_v44, %v3902_v10 }
 0x4b9   :  { %v1928_v28 = vmul.f32 0.5, %v1927_v52 }
 0x4ba   :  { %v1999_v7 = vmul.f32 %v4001_v50, %v1963_v21  ;;  %v1548_v49 = vpop.xlane.xlu0 %1547 }
 0x4bb   :  { %v1929_v26 = vsub.f32 1.5, %v1928_v28  ;;  %v1581_v45 = vmul.f32 %v1548_v49, %v3575_v20 }
 0x4bc   :  { %v2035_v16 = vadd.f32 %v4008_v14, %v1999_v7 }
 0x4bd   :  { %v1930_v13 = vmul.f32 %v2303_v57, %v1929_v26  ;;  %v2305_v4 = vpop.eup %2304  ;;  %v1613_v42 = vadd.f32 1e-05, %v1581_v45 }
 0x4be   :  { %2067 = vst [vmem:[#allocation2 + $0xe0] sm:$0xff] %v2035_v16  ;;  %v1906_v51 = vmul.f32 %v2305_v4, %v1612_v41  ;;  %vm1912_vm4 = vweird.f32 %v2305_v4 }
 0x4bf   :  { %v1934_v39 = vsel %vm1933_vm3, %v2303_v57, %v1930_v13  ;;  %2306 = vrsqrt.f32 %v1613_v42  ;;  %vm1913_vm6 = vmor %vm1911_vm5, %vm1912_vm4  ;;  %vm1921_vm8 = vweird.f32 %v1613_v42 }
 0x4c0   :  { %v1966_v10 = vmul.f32 %v1934_v39, %v3911_v15  ;;  %v1907_v24 = vmul.f32 %v2305_v4, %v1906_v51 }
 0x4c2   :  { %v2002_v56 = vmul.f32 %v4001_v50, %v1966_v10  ;;  %v1908_v22 = vmul.f32 0.5, %v1907_v24 }
 0x4c4   :  { %v2038_v30 = vadd.f32 %v4008_v14, %v2002_v56  ;;  %v1909_v36 = vsub.f32 1.5, %v1908_v22 }
 0x4c5   :  { %v2307_v38 = vpop.eup %2306 }
 0x4c6   :  { %2070 = vst [vmem:[#allocation2 + $0xf8] sm:$0xff] %v2038_v30  ;;  %v1910_v27 = vmul.f32 %v2305_v4, %v1909_v36  ;;  %v1916_v20 = vmul.f32 %v2307_v38, %v1613_v42  ;;  %vm1922_vm7 = vweird.f32 %v2307_v38 }
 0x4c7   :  { %vm1923_vm1 = vmor %vm1921_vm8, %vm1922_vm7 }
 0x4c8   :  { %v1914_v63 = vsel %vm1913_vm6, %v2305_v4, %v1910_v27  ;;  %v1917_v12 = vmul.f32 %v2307_v38, %v1916_v20 }
 0x4c9   :  { %v1964_v15 = vmul.f32 %v1914_v63, %v3922_v31 }
 0x4ca   :  { %v1918_v9 = vmul.f32 0.5, %v1917_v12 }
 0x4cb   :  { %v2000_v6 = vmul.f32 %v4001_v50, %v1964_v15 }
 0x4cc   :  { %v1919_v34 = vsub.f32 1.5, %v1918_v9 }
 0x4cd   :  { %v2036_v0 = vadd.f32 %v4008_v14, %v2000_v6 }
 0x4ce   :  { %v1920_v43 = vmul.f32 %v2307_v38, %v1919_v34 }
 0x4cf   :  { %2068 = vst [vmem:[#allocation2 + $0xe8] sm:$0xff] %v2036_v0 }
 0x4d0   :  { %v1924_v58 = vsel %vm1923_vm1, %v2307_v38, %v1920_v43 }
 0x4d1   :  { %v1965_v17 = vmul.f32 %v1924_v58, %v3929_v55 }
 0x4d3   :  { %v2001_v31 = vmul.f32 %v4001_v50, %v1965_v17 }
 0x4d5   :  { %v2037_v29 = vadd.f32 %v4008_v14, %v2001_v31 }
 0x4d7   :  { %2069 = vst [vmem:[#allocation2 + $0xf0] sm:$0xff] %v2037_v29 }
 0x4d8   :  { %2083 = dma.vmem_to_hbm [thread:$0]  %s2076_s8, 4096, %s2078_s24, [#allocation3], %s2342_s25, %s2342_s25, %s2343_s26  }
 0x4d9   :  { %2337 = dma.done.wait [#allocation3], 4096  }
 0x4da   :  { %2338 = vsyncadd [#allocation3], 4294963200 }
 0x4db   :  { %2088 = vsyncpa [#allocation3], 1 }

</bundles_post_ra>
